<compile_context>
chip_gen: v6e
topology: v6e:2x2x1
jax: 0.10.0
libtpu: 0.0.40
codegen_flags: <defaults>
</compile_context>

<pallas_src>
import functools
import math

import jax
import jax.numpy as jnp
from jax.experimental import pallas as pl
from jax.experimental.pallas import tpu as pltpu


def _round_up(x, m):
    return (x + m - 1) // m * m


# ----------------------------- Pallas kernel --------------------------------
def _lp_conv_maxpool_kernel(x_ref, w_ref, o_ref, *, ta):
    """x_ref: (D_PAD, TN) bf16  raw flattened inputs (one column per position)
       w_ref: (R, D_PAD)  bf16  zero-embedded shifted conv weights (resident)
       o_ref: (OC_G, TN)  f32   max over all (tau_out, theta_out) conv outputs

    One MXU matmul per tile (f32 accumulation); rows of the result are oc-major
    in groups of `ta` (ta % 8 == 0) so the reshape is a free row-split and the
    max-pool is a single batched cross-sublane reduce."""
    r = jnp.dot(w_ref[...], x_ref[...], preferred_element_type=jnp.float32)  # (R, TN)
    ocg, tn = o_ref.shape
    o_ref[...] = jnp.max(r.reshape(ocg, ta, tn), axis=1)


def conv_maxpool_pallas(x_ncta, w, *, tile_n=128):
    """x_ncta: (N, C, NTAU, A) f32, w: (OC, C, KH, KW) f32 -> (N, OC) f32.

    'Valid' cross-correlation over tau, circular over theta, followed by a full
    max-pool over the conv output -- computed as a single locally-connected
    matmul per N-tile against a zero-embedded shifted-weight matrix (the
    periodic theta wrap is baked into the weights; no input padding, no im2col).
    """
    N, C, NTAU, A = x_ncta.shape
    OC, _, KH, KW = w.shape
    assert KH <= NTAU and KW <= A
    T_OUT = NTAU - KH + 1
    TA = T_OUT * A
    D = C * NTAU * A
    D_PAD = _round_up(D, 128)
    # OC padded only to a sublane group of 8 (NOT 128): keeps MXU columns useful
    # and avoids useless DMA/VMEM, per the review.
    OC_G = _round_up(OC, 8)
    TA_G = _round_up(TA, 8)
    R = OC_G * TA_G

    # --- W_big[(oc, t_out, a_out), (c, t_in, a_in)] = w[oc, c, dh, dw]
    #     iff t_in == t_out + dh  and  a_in == (a_out + dw) % A, else 0. ---
    f32 = jnp.float32
    et = (jnp.arange(NTAU)[None, None, :]
          == (jnp.arange(T_OUT)[:, None, None] + jnp.arange(KH)[None, :, None])
          ).astype(f32)                                              # (T_OUT, KH, NTAU)
    ea = (jnp.arange(A)[None, None, :]
          == ((jnp.arange(A)[:, None, None] + jnp.arange(KW)[None, :, None]) % A)
          ).astype(f32)                                              # (A, KW, A)
    wb = jnp.einsum('ochw,thi,awj->otacij', w.astype(f32), et, ea,
                    precision=jax.lax.Precision.HIGHEST)             # (OC,T_OUT,A,C,NTAU,A)
    wb = wb.reshape(OC, TA, D)
    wb = jnp.pad(wb, ((0, OC_G - OC), (0, 0), (0, D_PAD - D)))       # zero oc rows / D cols
    if TA_G != TA:
        # Replicate a real conv-output row; NEVER zero-pad the max-pool domain.
        wb = jnp.concatenate(
            [wb, jnp.broadcast_to(wb[:, :1, :], (OC_G, TA_G - TA, D_PAD))], axis=1)
    wb = wb.reshape(R, D_PAD).astype(jnp.bfloat16)

    # --- Input: (N, D) -> contiguous per-tile (G, D_PAD, tile_n) bf16 blocks ---
    N_PAD = _round_up(N, tile_n)
    G = N_PAD // tile_n
    xf = x_ncta.reshape(N, D)
    xf = jnp.pad(xf, ((0, N_PAD - N), (0, D_PAD - D)))
    xf = jnp.transpose(xf.reshape(G, tile_n, D_PAD), (0, 2, 1)).astype(jnp.bfloat16)

    # VMEM per step: double-buffered in/out blocks + resident weight + f32 result.
    vmem_need = (2 * D_PAD * tile_n * 2 + 2 * R * D_PAD * 2
                 + 2 * OC_G * tile_n * 4 + R * tile_n * 4)
    vmem_limit = int(vmem_need * 1.5) if vmem_need * 1.5 > (16 << 20) else None

    kernel = functools.partial(_lp_conv_maxpool_kernel, ta=TA_G)
    out = pl.pallas_call(
        kernel,
        out_shape=jax.ShapeDtypeStruct((OC_G, N_PAD), jnp.float32),
        grid_spec=pl.GridSpec(
            grid=(G,),
            in_specs=[
                pl.BlockSpec((None, D_PAD, tile_n), lambda i: (i, 0, 0)),
                # Constant index_map -> small weight matrix DMA'd once / resident.
                pl.BlockSpec((R, D_PAD), lambda i: (0, 0)),
            ],
            out_specs=pl.BlockSpec((OC_G, tile_n), lambda i: (0, i)),
        ),
        compiler_params=pltpu.CompilerParams(
            dimension_semantics=("parallel",),       # megacore split on v7x
            vmem_limit_bytes=vmem_limit,
        ),
        cost_estimate=pl.CostEstimate(
            flops=2 * R * D_PAD * N_PAD,
            transcendentals=0,
            bytes_accessed=int(xf.size * 2 + wb.size * 2 + OC_G * N_PAD * 4),
        ),
    )(xf, wb)
    return out[:OC, :N].T                                            # (N, OC)


# ------------------------------ JAX glue -------------------------------------
def _log_polar_transform(inp, ntau, num_angles, r_min=1.0, r_max=6.0):
    """(B, C, H, W) -> (B, C, ntau, num_angles, H, W)."""
    # TODO(synk): LogPolarTransform class source was not provided; using a
    # deterministic nearest-neighbour log-polar sampler (zero-padded, stride 1)
    # with the same output axis convention (B, C, tau, theta, x', y').
    B, C, H, W = inp.shape
    t = jnp.arange(ntau, dtype=jnp.float32)
    radii = r_min * (r_max / r_min) ** (t / max(ntau - 1, 1))
    ang = 2.0 * jnp.pi * jnp.arange(num_angles, dtype=jnp.float32) / num_angles
    dy = jnp.round(radii[:, None] * jnp.sin(ang)[None, :]).astype(jnp.int32)
    dx = jnp.round(radii[:, None] * jnp.cos(ang)[None, :]).astype(jnp.int32)
    pad = int(math.ceil(r_max)) + 1
    xp = jnp.pad(inp, ((0, 0), (0, 0), (pad, pad), (pad, pad)))
    row = jnp.arange(H)[None, None, :, None] + pad + dy[:, :, None, None]   # (ntau,A,H,1)
    col = jnp.arange(W)[None, None, None, :] + pad + dx[:, :, None, None]   # (ntau,A,1,W)
    return xp[:, :, row, col]                                               # (B,C,ntau,A,H,W)


def _prepare(inp, w_v, w_g, *, ntau, num_angles):
    """Replicates the PyTorch glue: logpolar -> permute -> flatten, plus
    weight_norm(dim=0) on the conv weight.  (No theta padding here: the periodic
    wrap is baked into the Pallas weight matrix.)"""
    lp = _log_polar_transform(inp, ntau, num_angles)          # (B,C,ntau,A,H,W)
    x = jnp.transpose(lp, (0, 4, 5, 1, 2, 3))                 # (B,H,W,C,ntau,A)
    B, H, W, C = x.shape[:4]
    x = x.reshape(B * H * W, C, ntau, num_angles)             # (N,C,ntau,A)
    # weight_norm: w = g * v / ||v||, norm over dims (1,2,3) per out-channel
    norm = jnp.sqrt(jnp.sum(w_v * w_v, axis=(1, 2, 3), keepdims=True))
    w = w_g * w_v / norm
    return x, w, (B, H, W)


def logpolar_core_forward(inp, w_v, w_g, *, ntau, num_angles, tile_n=128):
    """_LogPolar_Core.forward with default config (pooling='max', topk=False,
    relative_encoding=False, spatial_pooling=None, spatial_trim=0)."""
    x, w, (B, H, W) = _prepare(inp, w_v, w_g, ntau=ntau, num_angles=num_angles)
    out = conv_maxpool_pallas(x, w, tile_n=tile_n)             # (N, OC) f32
    return out.reshape(B, H, W, -1, 1, 1)                      # (B, x', y', OC, tau'=1, theta'=1)


# ------------------------------- main -----------------------------------------
if __name__ == "__main__":
    key = jax.random.PRNGKey(0)
    k_inp, k_w = jax.random.split(key)

    B, C_IN, H, W = 2, 4, 16, 16
    OC, KH, KW = 5, 5, 5
    NTAU, NANG = 8, 16

    inp = jax.random.normal(k_inp, (B, C_IN, H, W), jnp.float32)

    # Deterministic kaiming_normal_ init for the weight_norm'd conv (fan_in mode)
    fan_in = C_IN * KH * KW
    w_v = jax.random.normal(k_w, (OC, C_IN, KH, KW), jnp.float32) * jnp.sqrt(2.0 / fan_in)
    w_g = jnp.sqrt(jnp.sum(w_v * w_v, axis=(1, 2, 3), keepdims=True))  # weight_norm init g=||v||

    out = logpolar_core_forward(inp, w_v, w_g, ntau=NTAU, num_angles=NANG)
    out = jax.block_until_ready(out)
    assert out.shape == (B, H, W, OC, 1, 1), out.shape

    # Pure-JAX reference of the hot path: periodic theta pad + VALID conv + full
    # max-pool, with bf16 inputs / f32 accumulation to match the kernel's MXU
    # contract (differences are summation-order only).
    x_raw, w_n, _ = _prepare(inp, w_v, w_g, ntau=NTAU, num_angles=NANG)
    x_pad = jnp.concatenate([x_raw, x_raw[..., : KW - 1]], axis=-1)     # pad_periodic
    ref_conv = jax.lax.conv_general_dilated(
        x_pad.astype(jnp.bfloat16), w_n.astype(jnp.bfloat16),
        window_strides=(1, 1), padding="VALID",
        dimension_numbers=("NCHW", "OIHW", "NCHW"),
        preferred_element_type=jnp.float32)
    ref = jnp.max(ref_conv, axis=(2, 3)).reshape(B, H, W, OC, 1, 1)
    assert jnp.allclose(out, ref, rtol=2e-2, atol=2e-2), \
        float(jnp.max(jnp.abs(out - ref)))

    print("KERNEL_OK")
</pallas_src>

<mosaic_0001>
module attributes {stable_mosaic.version = 11 : i64} {
  func.func @_lp_conv_maxpool_kernel(%arg0: i32, %arg1: memref<1x512x128xbf16, #tpu.memory_space<vmem>>, %arg2: memref<512x512xbf16, #tpu.memory_space<vmem>>, %arg3: memref<8x128xf32, #tpu.memory_space<vmem>>) attributes {dimension_semantics = [#tpu.dimension_semantics<parallel>], iteration_bounds = array<i64: 4>, scalar_prefetch = 0 : i64, scratch_operands = 0 : i64, tpu.core_type = #tpu.core_type<tc>, window_params = [{transform_indices = @transform_0, window_bounds = array<i64: 1, 512, 128>}, {pipeline_mode = #tpu.pipeline_mode<synchronous>, transform_indices = @transform_1, window_bounds = array<i64: 512, 512>}, {transform_indices = @transform_2, window_bounds = array<i64: 8, 128>}]} {
    %c0 = arith.constant 0 : index
    %c0_0 = arith.constant 0 : index
    %0 = vector.load %arg2[%c0, %c0_0] : memref<512x512xbf16, #tpu.memory_space<vmem>>, vector<512x512xbf16>
    %c0_1 = arith.constant 0 : index
    %c0_2 = arith.constant 0 : index
    %c0_3 = arith.constant 0 : index
    %1 = vector.load %arg1[%c0_1, %c0_2, %c0_3] : memref<1x512x128xbf16, #tpu.memory_space<vmem>>, vector<1x512x128xbf16>
    %2 = vector.shape_cast %1 : vector<1x512x128xbf16> to vector<512x128xbf16>
    %cst = arith.constant dense<0.000000e+00> : vector<512x128xf32>
    %3 = tpu.matmul %0, %2, %cst {dimension_numbers = #tpu.dot_dimension_numbers<[1], [0], [0], [1], [0, 0, 1, 1], [], []>} : vector<512x512xbf16>, vector<512x128xbf16>, vector<512x128xf32> -> vector<512x128xf32>
    %4 = vector.shape_cast %3 : vector<512x128xf32> to vector<8x64x128xf32>
    %cst_4 = arith.constant dense<0xFF800000> : vector<8x128xf32>
    %5 = vector.multi_reduction <maximumf>, %4, %cst_4 [1] : vector<8x64x128xf32> to vector<8x128xf32>
    %c0_5 = arith.constant 0 : index
    %c0_6 = arith.constant 0 : index
    %6 = vector.load %arg3[%c0_5, %c0_6] : memref<8x128xf32, #tpu.memory_space<vmem>>, vector<8x128xf32>
    tpu.vector_store %arg3[%c0_5, %c0_6], %5 {strides = array<i32>} : memref<8x128xf32, #tpu.memory_space<vmem>>, vector<8x128xf32>,
    return
  }
  func.func @transform_0(%arg0: i32) -> (i32, i32, i32) {
    %c0_i32 = arith.constant 0 : i32
    %c0_i32_0 = arith.constant 0 : i32
    %c0_i32_1 = arith.constant 0 : i32
    return %arg0, %c0_i32, %c0_i32_0 : i32, i32, i32
  }
  func.func @transform_1(%arg0: i32) -> (i32, i32) {
    %c0_i32 = arith.constant 0 : i32
    %c0_i32_0 = arith.constant 0 : i32
    %c0_i32_1 = arith.constant 0 : i32
    return %c0_i32, %c0_i32_0 : i32, i32
  }
  func.func @transform_2(%arg0: i32) -> (i32, i32) {
    %c0_i32 = arith.constant 0 : i32
    %c0_i32_0 = arith.constant 0 : i32
    return %c0_i32, %arg0 : i32, i32
  }
}

</mosaic_0001>

<bundles_post_ra>
// kernel: tpu_custom_call.1
= control target key start
LH: loop header
LB: loop body
LE: loop exit
PB: predicated region body
PF: predicated region fallthrough
CT: control target
= control target key end

     0   :  { %7 = vsyncpa [#allocation3], 0  ;;  %s2852_s0 = inlined_call_operand.hbm [shape: bf16[4,512,128], index: 0, kind: input, shape index: {}]   ;;  %s2853_s1 = inlined_call_operand.hbm [shape: bf16[512,512], index: 1, kind: input, shape index: {}]   ;;  %s2854_s2 = inlined_call_operand.hbm [shape: f32[8,512], index: 2, kind: output, shape index: {}]  }
   0x1   :  { %9 = vsyncpa [#allocation3 + $0x1], 0 }
   0x2   :  { %10 = vsyncpa [#allocation6], 0 }
   0x3   :  { %11 = vsyncpa [#allocation4], 0 }
   0x4   :  { %13 = vsyncpa [#allocation4 + $0x1], 0  ;;  %s2611_s9 = smov 0   ;;  %s2613_s10 = smov 0  }
   0x5   :  { %s2615_s11 = smov 0   ;;  %s2617_s12 = smov 0  }
   0x6 LB: > { %s2632_s13 = sadd.s32 4294967295, %s2586_s12   ;;  %s2002_s14 = sadd.s32 4294967294, %s2586_s12   ;;  %s2586_s12 = sphi %s2617_s12, %s2875_s12   ;;  %s2582_s11 = sphi %s2615_s11, %s2874_s11   ;;  %s2578_s10 = sphi %s2613_s10, %s2873_s10   ;;  %s2574_s9 = sphi %s2611_s9, %s2872_s9  }
   0x7   : > { %p39_p0 = scmp.ne.s32.totalorder %s2578_s10, %s2574_s9  ;;  %p2855_p1 = scmp.eq.s32.totalorder %s2632_s13, 0 }
   0x8   : > { %p90_p3 = scmp.eq.s32.totalorder %s2002_s14, 3  ;;  %p2003_p5 = scmp.ge.s32.totalorder %s2586_s12, 1 }
   0x9   : > { %p2641_p4 = por %p2855_p1, %p39_p0  ;;  %p97_p7 = scmp.lt.s32.totalorder %s2586_s12, 5 }
   0xa   : > { %p2646_p6 = por %p90_p3, %p39_p0  ;;  %s2588_s18 = smov [#allocation5]  }
   0xb   : > { %s2859_s15 = scalar_select %p2641_p4, 1, 0 }
   0xc   : > { %s2860_s16 = scalar_select %p2646_p6, 1, 0 }
   0xd   : > { %p2651_p8 = pnand %p2003_p5, %p97_p7  ;;  %s109_s19 = sshll.u32 %s2588_s18, 4  ;;  %s110_s19 = int_to_ptr.vmem [resolvable:$true] %s109_s19 }
   0xe   : > { %s2664_s21 = sadd.s32 1, %s2586_s12   ;;  %s26_s22 = sadd.s32 1, %s2582_s11 }
   0xf   : > { %s2861_s17 = scalar_select %p2651_p8, 1, 0 }
  0x10   : > { %p2186_p9 = pneg %p2651_p8  ;;  %s23_s23 = ssub.s32 %s2586_s12, %s2664_s21 }
  0x11   : > { %s2475_s24 = scalar_lea.vmem %s110_s19, 16384  ;;  %p2483_p3 = scmp.lt.s32.totalorder %s110_s19, %s110_s19 }
  0x12   : > { %p2659_p10 = pnand %p2186_p9, %p2855_p1  ;;  %p2476_p12 = scmp.ne.s32.totalorder %s110_s19, %s2475_s24 }
  0x13   : > { %p2484_p5 = scmp.lt.s32.totalorder %s2475_s24, %s2475_s24 }
  0x14   : > { %p2466_p11 = pneg %p2659_p10 }
  0x15   : > { %p2485_p7 = por %p2484_p5, %p2483_p3 }
  0x16   : > { %p2478_p13 = pnand %p2476_p12, %p2466_p11 }
  0x18   : > { %p2479_p0 = pneg %p2478_p13 }
  0x1a   : > { %p2486_p2 = pnand %p2485_p7, %p2479_p0 }
  0x1c   : > { %2489 = shalt.err (!%p2486_p2)
}
  0x1d   : > { %s2589_s25 = smov 256   ;;  %s2590_s26 = smov 16  }
  0x1e   : > { %2189 = dma.hbm_to_vmem [thread:$0]  (!%p2659_p10), %s2853_s1, 16384, %s110_s19, [#allocation6], %s2589_s25, %s2589_s25, %s2590_s26  }
  0x1f   : > { %p24_p9 = scmp.eq.s32.totalorder %s23_s23, 0  ;;  %p33_p11 = scmp.ne.s32.totalorder %s2582_s11, %s2578_s10 }
  0x20   : > { %p34_p12 = scmp.eq.s32.totalorder %s2586_s12, 0  ;;  %p2199_p2 = scmp.lt.s32.totalorder %s2586_s12, 4 }
  0x21   : > { %s2681_s29 = scalar_select %p24_p9, %s2582_s11, %s26_s22  }
  0x22   : > { %p35_p13 = por %p34_p12, %p33_p11  ;;  %p2863_p0 = scmp.eq.s32.totalorder %s2632_s13, 3 }
  0x23   : > { %s123_s3 = sand.u32 1, %s2582_s11   ;;  %s2177_s4 = sshll.u32 %s2586_s12, 12 }
  0x24   : > { %p2685_p3 = por %p2863_p0, %p33_p11  ;;  %s2006_s5 = sshll.u32 %s123_s3, 8 }
  0x25   : > { %s2694_s8 = scalar_lea.hbm %s2852_s0, %s2177_s4  ;;  %s127_s14 = scalar_lea.vmem [#allocation2], %s2006_s5 }
  0x26   : > { %s2864_s30 = scalar_select %p2685_p3, 1, 0 }
  0x27   : > { %s134_s18 = sshll.u32 %s127_s14, 4  ;;  %p2696_p10 = pnand %p2199_p2, %p35_p13  ;;  %s2700_s18 = int_to_ptr.vmem [resolvable:$true] %s134_s18 }
  0x28   : > { %s2702_s20 = scalar_lea.sflag [#allocation3], %s123_s3  ;;  %s2490_s22 = scalar_lea.hbm %s2694_s8, 4096 }
  0x29   : > { %p2491_p5 = scmp.ne.s32.totalorder %s2694_s8, %s2490_s22  ;;  %p2492_p7 = pneg %p2696_p10 }
  0x2a   : > { %s2495_s25 = scalar_lea.hbm %s2852_s0, 16384  ;;  %p2496_p12 = scmp.lt.s32.totalorder %s2694_s8, %s2852_s0 }
  0x2b   : > { %p2493_p9 = pnand %p2492_p7, %p2491_p5  ;;  %p2497_p2 = scmp.lt.s32.totalorder %s2495_s25, %s2490_s22 }
  0x2d   : > { %p2494_p11 = pneg %p2493_p9  ;;  %p2498_p13 = por %p2497_p2, %p2496_p12 }
  0x2f   : > { %p2499_p0 = pnand %p2498_p13, %p2494_p11 }
  0x31   : > { %2502 = shalt.err (!%p2499_p0)
}
  0x32   : > { %s2503_s28 = scalar_lea.vmem %s2700_s18, 4096  ;;  %s2591_s3 = smov [#allocation2]  }
  0x33   : > { %p2504_p1 = scmp.ne.s32.totalorder %s2700_s18, %s2503_s28  ;;  %s2508_s4 = sshll.u32 %s2591_s3, 4  ;;  %s2509_s4 = int_to_ptr.vmem [resolvable:$false] %s2508_s4 }
  0x34   : > { %s2510_s5 = scalar_lea.vmem %s2509_s4, 8192  ;;  %p2511_p9 = scmp.lt.s32.totalorder %s2700_s18, %s2509_s4 }
  0x35   : > { %p2506_p6 = pnand %p2504_p1, %p2492_p7  ;;  %p2512_p3 = scmp.lt.s32.totalorder %s2510_s5, %s2503_s28 }
  0x37   : > { %p2507_p5 = pneg %p2506_p6  ;;  %p2513_p4 = por %p2512_p3, %p2511_p9 }
  0x39   : > { %p2514_p8 = pnand %p2513_p4, %p2507_p5 }
  0x3b   : > { %2517 = shalt.err (!%p2514_p8)
}
  0x3c   : > { %s2592_s6 = smov 64   ;;  %s2593_s7 = smov 4  }
  0x3d   : > { %2193 = dma.hbm_to_vmem [thread:$0]  (!%p2696_p10), %s2694_s8, 4096, %s2700_s18, %s2702_s20, %s2592_s6, %s2592_s6, %s2593_s7  }
  0x3e   : > { %p2866_p1 = scmp.ne.s32.totalorder %s2861_s17, 0 }
  0x3f   : > { %s2726_s14 = sand.u32 (!%p2866_p1), 1, %s2578_s10   ;;  %p2867_p4 = scmp.ne.s32.totalorder (!%p2866_p1), %s2859_s15, 0 }
  0x40   : > { %146 = sbr.rel (%p2866_p1) target bundleno = 613 (0x265), region = 28  ;;  %s2010_s22 = sshll.u32 (!%p2866_p1), %s2726_s14, 8 }
  0x41   : > { %s149_s23 = scalar_lea.sflag (!%p2866_p1), [#allocation3], %s2726_s14  ;;  %s2730_s24 = scalar_lea.vmem (!%p2866_p1), [#allocation2], %s2010_s22 }
  0x45   : > { %2561 = dma.done.wait (%p2867_p4), %s149_s23, 4096  }
  0x46   : > { %2563 = vsyncadd (%p2867_p4), %s149_s23, 4294963200  ;;  %p2868_p6 = scmp.eq.s32.totalorder %s2632_s13, 0 }
  0x48   : > { %2565 = dma.done.wait (%p2868_p6), [#allocation6], 16384   ;;  %p2869_p8 = pmov %p2868_p6 }
  0x49   : > { %v2594_v0 = vmov 0   ;;  %v2240_v1 = vld [vmem:[%s2730_s24 + $0x38] sm:$0xff]   ;;  %v2242_v3 = vld [vmem:[%s2730_s24 + $0x30] sm:$0xff]   ;;  %v2244_v5 = vld [vmem:[%s2730_s24 + $0x28] sm:$0xff]   ;;  %vm1892_vm0 = vcmask 1041409   ;;  %vm1894_vm1 = vcmask 1042434  }
  0x4a   : > { %2567 = vsyncadd (%p2869_p8), [#allocation6], 4294950912  ;;  %1202 = vmatprep.subr.bf16.mxu0 %v2594_v0  ;;  %1491 = vmatprep.subr.bf16.mxu1 %v2594_v0  ;;  %v2241_v2 = vld [vmem:[%s2730_s24 + $0xb8] sm:$0xff]   ;;  %v2243_v4 = vld [vmem:[%s2730_s24 + $0xb0] sm:$0xff]   ;;  %vm1896_vm2 = vcmask 1043459   ;;  %vm1898_vm3 = vcmask 1044484  }
  0x4b   : > { %1203 = vmatpush1.bf16.msra.mxu0 %v2240_v1  ;;  %1492 = vmatpush1.bf16.msra.mxu1 %v2241_v2  ;;  %v2245_v6 = vld [vmem:[%s2730_s24 + $0xa8] sm:$0xff]   ;;  %v2246_v7 = vld [vmem:[%s2730_s24 + $0x20] sm:$0xff]   ;;  %v2248_v9 = vld [vmem:[%s2730_s24 + $0x18] sm:$0xff]   ;;  %vm1900_vm4 = vcmask 1045509   ;;  %s2012_s15 = sshll.u32 %s2726_s14, 3  ;;  %vm1902_vm5 = vcmask 1046534  }
  0x4c   : > { %1204 = vmatprep.subr.bf16.mxu0 %v2594_v0  ;;  %1493 = vmatprep.subr.bf16.mxu1 %v2594_v0  ;;  %v2247_v8 = vld [vmem:[%s2730_s24 + $0xa0] sm:$0xff]   ;;  %v2249_v10 = vld [vmem:[%s2730_s24 + $0x98] sm:$0xff]   ;;  %v2250_v11 = vld [vmem:[%s2730_s24 + $0x10] sm:$0xff]   ;;  %s2174_s17 = sshll.u32 %s2632_s13, 7  ;;  %s176_s8 = scalar_lea.vmem [#allocation7], %s2012_s15  ;;  %vm1904_vm6 = vcmask 1047559  }
  0x4d   : > { %v2251_v12 = vld [vmem:[%s2730_s24 + $0x90] sm:$0xff]   ;;  %v2252_v13 = vld [vmem:[%s2730_s24 + $0x8] sm:$0xff]   ;;  %v2254_v15 = vld [vmem:[%s2730_s24] sm:$0xff]   ;;  %s1922_s18 = sshll.u32 %s176_s8, 4  ;;  %s2816_s25 = scalar_lea.hbm %s2854_s2, %s2174_s17  ;;  %s1923_s18 = int_to_ptr.vmem [resolvable:$true] %s1922_s18 }
  0x4e   : > { %v2253_v14 = vld [vmem:[%s2730_s24 + $0x88] sm:$0xff]   ;;  %v2255_v16 = vld [vmem:[%s2730_s24 + $0x80] sm:$0xff]   ;;  %v2256_v17 = vld [vmem:[%s2730_s24 + $0x78] sm:$0xff]   ;;  %s1909_s26 = scalar_lea.sflag [#allocation4], %s2726_s14  ;;  %s2518_s27 = scalar_lea.vmem %s1923_s18, 128 }
  0x4f   : > { %1205 = vmatpush1.bf16.msra.mxu0 %v2242_v3  ;;  %1494 = vmatpush1.bf16.msra.mxu1 %v2243_v4  ;;  %v2257_v18 = vld [vmem:[%s2730_s24 + $0xf8] sm:$0xff]   ;;  %v2274_v19 = vld [vmem:[#allocation5 + $0x4] ss:$16 sps:$4 sm:$0xff]   ;;  %v2260_v23 = vld [vmem:[%s2730_s24 + $0x68] sm:$0xff]   ;;  %p2519_p3 = scmp.ne.s32.totalorder %s1923_s18, %s2518_s27  ;;  %p2870_p10 = scmp.ne.s32.totalorder %s2864_s30, 0 }
  0x50   : > { %1206 = vmatprep.subr.bf16.mxu0 %v2594_v0  ;;  %1495 = vmatprep.subr.bf16.mxu1 %v2594_v0  ;;  %v2258_v20 = vld [vmem:[%s2730_s24 + $0x70] sm:$0xff]   ;;  %v2277_v21 = vld [vmem:[#allocation5 + $0xc] ss:$16 sps:$4 sm:$0xff]   ;;  %v2262_v25 = vld [vmem:[%s2730_s24 + $0x60] sm:$0xff]   ;;  %s2595_s13 = smov [#allocation7]  }
  0x51   : > { %v2259_v22 = vld [vmem:[%s2730_s24 + $0xf0] sm:$0xff]   ;;  %1234 = vmatprep.mubr.bf16.mxu0 %v2274_v19  ;;  %1523 = vmatprep.mubr.bf16.mxu1 %v2277_v21  ;;  %v2261_v24 = vld [vmem:[%s2730_s24 + $0xe8] sm:$0xff]   ;;  %v2263_v26 = vld [vmem:[%s2730_s24 + $0xe0] sm:$0xff]   ;;  %p2520_p7 = pnand %p2519_p3, %p2870_p10  ;;  %s2522_s28 = sshll.u32 %s2595_s13, 4  ;;  %s2523_s28 = int_to_ptr.vmem [resolvable:$false] %s2522_s28 }
  0x52   : > { %v2264_v27 = vld [vmem:[%s2730_s24 + $0x58] sm:$0xff]   ;;  %v2266_v29 = vld [vmem:[%s2730_s24 + $0x50] sm:$0xff]   ;;  %v2268_v31 = vld [vmem:[%s2730_s24 + $0x48] sm:$0xff]   ;;  %s2524_s3 = scalar_lea.vmem %s2523_s28, 256  ;;  %p2525_p12 = scmp.lt.s32.totalorder %s1923_s18, %s2523_s28 }
  0x53   : > { %1207 = vmatpush1.bf16.msra.mxu0 %v2244_v5  ;;  %1496 = vmatpush1.bf16.msra.mxu1 %v2245_v6  ;;  %v2265_v28 = vld [vmem:[%s2730_s24 + $0xd8] sm:$0xff]   ;;  %v2267_v30 = vld [vmem:[%s2730_s24 + $0xd0] sm:$0xff]   ;;  %v2269_v32 = vld [vmem:[%s2730_s24 + $0xc8] sm:$0xff]   ;;  %p2521_p11 = pneg %p2520_p7  ;;  %p2526_p2 = scmp.lt.s32.totalorder %s2524_s3, %s2518_s27 }
  0x54   : > { %1208 = vmatprep.subr.bf16.mxu0 %v2594_v0  ;;  %1497 = vmatprep.subr.bf16.mxu1 %v2594_v0  ;;  %v2270_v33 = vld [vmem:[%s2730_s24 + $0x40] sm:$0xff]   ;;  %v2275_v36 = vld [vmem:[#allocation5 + $0x8] ss:$16 sps:$4 sm:$0xff]   ;;  %v2280_v38 = vld [vmem:[#allocation5 + $0x2c] ss:$16 sps:$4 sm:$0xff]  }
  0x55   : > { %v2271_v34 = vld [vmem:[%s2730_s24 + $0xc0] sm:$0xff]   ;;  %v2283_v40 = vld [vmem:[#allocation5 + $0x28] ss:$16 sps:$4 sm:$0xff]   ;;  %v2286_v42 = vld [vmem:[#allocation5 + $0x4c] ss:$16 sps:$4 sm:$0xff]   ;;  %p2527_p13 = por %p2526_p2, %p2525_p12 }
  0x56   : > { %v2272_v35 = vld [vmem:[#allocation5] ss:$16 sps:$4 sm:$0xff]   ;;  %v2278_v37 = vld [vmem:[#allocation5 + $0x24] ss:$16 sps:$4 sm:$0xff]   ;;  %v2289_v44 = vld [vmem:[#allocation5 + $0x48] ss:$16 sps:$4 sm:$0xff]  }
  0x57   : > { %1209 = vmatpush1.bf16.msra.mxu0 %v2246_v7  ;;  %1498 = vmatpush1.bf16.msra.mxu1 %v2247_v8  ;;  %v2282_v39 = vld [vmem:[#allocation5 + $0x20] ss:$16 sps:$4 sm:$0xff]   ;;  %v2284_v41 = vld [vmem:[#allocation5 + $0x44] ss:$16 sps:$4 sm:$0xff]   ;;  %v2292_v46 = vld [vmem:[#allocation5 + $0x6c] ss:$16 sps:$4 sm:$0xff]   ;;  %p2528_p0 = pnand %p2527_p13, %p2521_p11 }
  0x58   : > { %1210 = vmatprep.subr.bf16.mxu0 %v2594_v0  ;;  %1499 = vmatprep.subr.bf16.mxu1 %v2594_v0  ;;  %v2288_v43 = vld [vmem:[#allocation5 + $0x40] ss:$16 sps:$4 sm:$0xff]   ;;  %v2290_v45 = vld [vmem:[#allocation5 + $0x64] ss:$16 sps:$4 sm:$0xff]   ;;  %v2295_v48 = vld [vmem:[#allocation5 + $0x68] ss:$16 sps:$4 sm:$0xff]  }
  0x59   : > { %v2294_v47 = vld [vmem:[#allocation5 + $0x60] ss:$16 sps:$4 sm:$0xff]   ;;  %v2296_v49 = vld [vmem:[#allocation5 + $0x84] ss:$16 sps:$4 sm:$0xff]   ;;  %v2298_v50 = vld [vmem:[#allocation5 + $0x8c] ss:$16 sps:$4 sm:$0xff]  }
  0x5a   : > { %v2300_v51 = vld [vmem:[#allocation5 + $0x80] ss:$16 sps:$4 sm:$0xff]   ;;  %v2301_v52 = vld [vmem:[#allocation5 + $0x88] ss:$16 sps:$4 sm:$0xff]   ;;  %v2302_v53 = vld [vmem:[#allocation5 + $0xa4] ss:$16 sps:$4 sm:$0xff]  }
  0x5b   : > { %1211 = vmatpush1.bf16.msra.mxu0 %v2248_v9  ;;  %1500 = vmatpush1.bf16.msra.mxu1 %v2249_v10  ;;  %v2304_v54 = vld [vmem:[#allocation5 + $0xac] ss:$16 sps:$4 sm:$0xff]   ;;  %v2306_v55 = vld [vmem:[#allocation5 + $0xa0] ss:$16 sps:$4 sm:$0xff]   ;;  %v2307_v56 = vld [vmem:[#allocation5 + $0xa8] ss:$16 sps:$4 sm:$0xff]  }
  0x5c   : > { %1212 = vmatprep.subr.bf16.mxu0 %v2594_v0  ;;  %1501 = vmatprep.subr.bf16.mxu1 %v2594_v0  ;;  %v2308_v57 = vld [vmem:[#allocation5 + $0xc4] ss:$16 sps:$4 sm:$0xff]   ;;  %v2310_v58 = vld [vmem:[#allocation5 + $0xcc] ss:$16 sps:$4 sm:$0xff]   ;;  %v2312_v59 = vld [vmem:[#allocation5 + $0xc0] ss:$16 sps:$4 sm:$0xff]  }
  0x5d   : > { %v2313_v60 = vld [vmem:[#allocation5 + $0xc8] ss:$16 sps:$4 sm:$0xff]   ;;  %v2314_v61 = vld [vmem:[#allocation5 + $0xe4] ss:$16 sps:$4 sm:$0xff]   ;;  %v2316_v62 = vld [vmem:[#allocation5 + $0xec] ss:$16 sps:$4 sm:$0xff]  }
  0x5e   : > { %v2318_v63 = vld [vmem:[#allocation5 + $0xe0] ss:$16 sps:$4 sm:$0xff]   ;;  %v2320_v1 = vld [vmem:[#allocation5 + $0x104] ss:$16 sps:$4 sm:$0xff]   ;;  %v2322_v2 = vld [vmem:[#allocation5 + $0x10c] ss:$16 sps:$4 sm:$0xff]  }
  0x5f   : > { %1213 = vmatpush1.bf16.msra.mxu0 %v2250_v11  ;;  %1502 = vmatpush1.bf16.msra.mxu1 %v2251_v12  ;;  %v2324_v3 = vld [vmem:[#allocation5 + $0x100] ss:$16 sps:$4 sm:$0xff]   ;;  %v2325_v4 = vld [vmem:[#allocation5 + $0x108] ss:$16 sps:$4 sm:$0xff]   ;;  %v2326_v5 = vld [vmem:[#allocation5 + $0x124] ss:$16 sps:$4 sm:$0xff]  }
  0x60   : > { %1214 = vmatprep.subr.bf16.mxu0 %v2594_v0  ;;  %1503 = vmatprep.subr.bf16.mxu1 %v2594_v0  ;;  %v2328_v6 = vld [vmem:[#allocation5 + $0x12c] ss:$16 sps:$4 sm:$0xff]   ;;  %v2330_v7 = vld [vmem:[#allocation5 + $0x120] ss:$16 sps:$4 sm:$0xff]   ;;  %v2331_v8 = vld [vmem:[#allocation5 + $0x128] ss:$16 sps:$4 sm:$0xff]  }
  0x61   : > { %v2332_v9 = vld [vmem:[#allocation5 + $0x144] ss:$16 sps:$4 sm:$0xff]   ;;  %v2334_v10 = vld [vmem:[#allocation5 + $0x14c] ss:$16 sps:$4 sm:$0xff]   ;;  %v2336_v11 = vld [vmem:[#allocation5 + $0x140] ss:$16 sps:$4 sm:$0xff]  }
  0x62   : > { %v2337_v12 = vld [vmem:[#allocation5 + $0x148] ss:$16 sps:$4 sm:$0xff]   ;;  %v2348_v19 = vld [vmem:[#allocation5 + $0x180] ss:$16 sps:$4 sm:$0xff]   ;;  %v2350_v21 = vld [vmem:[#allocation5 + $0x1a4] ss:$16 sps:$4 sm:$0xff]  }
  0x63   : > { %1215 = vmatpush1.bf16.msra.mxu0 %v2252_v13  ;;  %1504 = vmatpush1.bf16.msra.mxu1 %v2253_v14  ;;  %v2338_v13 = vld [vmem:[#allocation5 + $0x164] ss:$16 sps:$4 sm:$0xff]   ;;  %v2340_v14 = vld [vmem:[#allocation5 + $0x16c] ss:$16 sps:$4 sm:$0xff]  }
  0x64   : > { %1216 = vmatprep.subr.bf16.mxu0 %v2594_v0  ;;  %1505 = vmatprep.subr.bf16.mxu1 %v2594_v0 }
  0x67   : > { %1217 = vmatpush1.bf16.msra.mxu0 %v2254_v15  ;;  %1506 = vmatpush1.bf16.msra.mxu1 %v2255_v16  ;;  %v2342_v15 = vld [vmem:[#allocation5 + $0x160] ss:$16 sps:$4 sm:$0xff]   ;;  %v2343_v16 = vld [vmem:[#allocation5 + $0x168] ss:$16 sps:$4 sm:$0xff]  }
  0x68   : > { %1218 = vmatprep.subr.bf16.mxu0 %v2594_v0  ;;  %1507 = vmatprep.subr.bf16.mxu1 %v2594_v0 }
  0x6b   : > { %1219 = vmatpush2.bf16.msra.mxu0 %v2256_v17  ;;  %1508 = vmatpush2.bf16.msra.mxu1 %v2257_v18  ;;  %v2344_v17 = vld [vmem:[#allocation5 + $0x184] ss:$16 sps:$4 sm:$0xff]   ;;  %v2346_v18 = vld [vmem:[#allocation5 + $0x18c] ss:$16 sps:$4 sm:$0xff]  }
  0x6c   : > { %1220 = vmatprep.subr.bf16.mxu0 %v2594_v0  ;;  %1509 = vmatprep.subr.bf16.mxu1 %v2594_v0 }
  0x6f   : > { %1221 = vmatpush2.bf16.msra.mxu0 %v2258_v20  ;;  %1510 = vmatpush2.bf16.msra.mxu1 %v2259_v22  ;;  %v2349_v20 = vld [vmem:[#allocation5 + $0x188] ss:$16 sps:$4 sm:$0xff]   ;;  %v2352_v22 = vld [vmem:[#allocation5 + $0x1ac] ss:$16 sps:$4 sm:$0xff]  }
  0x70   : > { %1222 = vmatprep.subr.bf16.mxu0 %v2594_v0  ;;  %1511 = vmatprep.subr.bf16.mxu1 %v2594_v0 }
  0x73   : > { %1223 = vmatpush2.bf16.msra.mxu0 %v2260_v23  ;;  %1512 = vmatpush2.bf16.msra.mxu1 %v2261_v24  ;;  %v2354_v23 = vld [vmem:[#allocation5 + $0x1a0] ss:$16 sps:$4 sm:$0xff]   ;;  %v2355_v24 = vld [vmem:[#allocation5 + $0x1a8] ss:$16 sps:$4 sm:$0xff]  }
  0x74   : > { %1224 = vmatprep.subr.bf16.mxu0 %v2594_v0  ;;  %1513 = vmatprep.subr.bf16.mxu1 %v2594_v0 }
  0x77   : > { %1225 = vmatpush2.bf16.msra.mxu0 %v2262_v25  ;;  %1514 = vmatpush2.bf16.msra.mxu1 %v2263_v26  ;;  %v2356_v25 = vld [vmem:[#allocation5 + $0x1c4] ss:$16 sps:$4 sm:$0xff]   ;;  %v2358_v26 = vld [vmem:[#allocation5 + $0x1cc] ss:$16 sps:$4 sm:$0xff]  }
  0x78   : > { %1226 = vmatprep.subr.bf16.mxu0 %v2594_v0  ;;  %1515 = vmatprep.subr.bf16.mxu1 %v2594_v0 }
  0x7b   : > { %1227 = vmatpush2.bf16.msra.mxu0 %v2264_v27  ;;  %1516 = vmatpush2.bf16.msra.mxu1 %v2265_v28  ;;  %v2360_v27 = vld [vmem:[#allocation5 + $0x1c0] ss:$16 sps:$4 sm:$0xff]   ;;  %v2361_v28 = vld [vmem:[#allocation5 + $0x1c8] ss:$16 sps:$4 sm:$0xff]  }
  0x7c   : > { %1228 = vmatprep.subr.bf16.mxu0 %v2594_v0  ;;  %1517 = vmatprep.subr.bf16.mxu1 %v2594_v0 }
  0x7f   : > { %1229 = vmatpush2.bf16.msra.mxu0 %v2266_v29  ;;  %1518 = vmatpush2.bf16.msra.mxu1 %v2267_v30  ;;  %v2362_v29 = vld [vmem:[#allocation5 + $0x1e4] ss:$16 sps:$4 sm:$0xff]   ;;  %v2364_v30 = vld [vmem:[#allocation5 + $0x1ec] ss:$16 sps:$4 sm:$0xff]  }
  0x80   : > { %1230 = vmatprep.subr.bf16.mxu0 %v2594_v0  ;;  %1519 = vmatprep.subr.bf16.mxu1 %v2594_v0 }
  0x83   : > { %1231 = vmatpush2.bf16.msra.mxu0 %v2268_v31  ;;  %1520 = vmatpush2.bf16.msra.mxu1 %v2269_v32  ;;  %v2366_v31 = vld [vmem:[#allocation5 + $0x1e0] ss:$16 sps:$4 sm:$0xff]   ;;  %v2367_v32 = vld [vmem:[#allocation5 + $0x1e8] ss:$16 sps:$4 sm:$0xff]  }
  0x84   : > { %1232 = vmatprep.subr.bf16.mxu0 %v2594_v0  ;;  %1521 = vmatprep.subr.bf16.mxu1 %v2594_v0  ;;  %v2319_v0 = vld [vmem:[#allocation5 + $0xe8] ss:$16 sps:$4 sm:$0xff]  }
  0x87   : > { %1233 = vmatpush2.bf16.msra.mxu0 %v2270_v33  ;;  %1522 = vmatpush2.bf16.msra.mxu1 %v2271_v34  ;;  %v2368_v33 = vld [vmem:[#allocation5 + $0x204] ss:$16 sps:$4 sm:$0xff]   ;;  %v2370_v34 = vld [vmem:[#allocation5 + $0x20c] ss:$16 sps:$4 sm:$0xff]  }
  0x8a   : > { %1235 = vmatmul.mubr.bf16.vlgmr.msra.gmra.mxu0 %v2272_v35  ;;  %1524 = vmatmul.mubr.bf16.vlgmr.msra.gmra.mxu1 %v2275_v36  ;;  %v2372_v35 = vld [vmem:[#allocation5 + $0x200] ss:$16 sps:$4 sm:$0xff]   ;;  %v2373_v36 = vld [vmem:[#allocation5 + $0x208] ss:$16 sps:$4 sm:$0xff]  }
  0x8b   : > { %1242 = vmatprep.mubr.bf16.mxu0 %v2278_v37  ;;  %1531 = vmatprep.mubr.bf16.mxu1 %v2280_v38  ;;  %v2374_v37 = vld [vmem:[#allocation5 + $0x224] ss:$16 sps:$4 sm:$0xff]   ;;  %v2376_v38 = vld [vmem:[#allocation5 + $0x22c] ss:$16 sps:$4 sm:$0xff]  }
  0x92   : > { %1243 = vmatmul.mubr.bf16.gmra.mxu0 %v2282_v39  ;;  %1532 = vmatmul.mubr.bf16.gmra.mxu1 %v2283_v40  ;;  %v2378_v39 = vld [vmem:[#allocation5 + $0x220] ss:$16 sps:$4 sm:$0xff]   ;;  %v2379_v40 = vld [vmem:[#allocation5 + $0x228] ss:$16 sps:$4 sm:$0xff]  }
  0x93   : > { %1250 = vmatprep.mubr.bf16.mxu0 %v2284_v41  ;;  %1539 = vmatprep.mubr.bf16.mxu1 %v2286_v42  ;;  %v2380_v41 = vld [vmem:[#allocation5 + $0x244] ss:$16 sps:$4 sm:$0xff]   ;;  %v2382_v42 = vld [vmem:[#allocation5 + $0x24c] ss:$16 sps:$4 sm:$0xff]  }
  0x9a   : > { %1251 = vmatmul.mubr.bf16.gmra.mxu0 %v2288_v43  ;;  %1540 = vmatmul.mubr.bf16.gmra.mxu1 %v2289_v44  ;;  %v2384_v43 = vld [vmem:[#allocation5 + $0x240] ss:$16 sps:$4 sm:$0xff]   ;;  %v2385_v44 = vld [vmem:[#allocation5 + $0x248] ss:$16 sps:$4 sm:$0xff]  }
  0x9b   : > { %1258 = vmatprep.mubr.bf16.mxu0 %v2290_v45  ;;  %1547 = vmatprep.mubr.bf16.mxu1 %v2292_v46  ;;  %v2386_v45 = vld [vmem:[#allocation5 + $0x264] ss:$16 sps:$4 sm:$0xff]   ;;  %v2388_v46 = vld [vmem:[#allocation5 + $0x26c] ss:$16 sps:$4 sm:$0xff]  }
  0xa2   : > { %1259 = vmatmul.mubr.bf16.gmra.mxu0 %v2294_v47  ;;  %1548 = vmatmul.mubr.bf16.gmra.mxu1 %v2295_v48  ;;  %v2390_v47 = vld [vmem:[#allocation5 + $0x260] ss:$16 sps:$4 sm:$0xff]   ;;  %v2391_v48 = vld [vmem:[#allocation5 + $0x268] ss:$16 sps:$4 sm:$0xff]  }
  0xa3   : > { %1266 = vmatprep.mubr.bf16.mxu0 %v2296_v49  ;;  %1555 = vmatprep.mubr.bf16.mxu1 %v2298_v50  ;;  %v2392_v49 = vld [vmem:[#allocation5 + $0x284] ss:$16 sps:$4 sm:$0xff]   ;;  %v2394_v50 = vld [vmem:[#allocation5 + $0x28c] ss:$16 sps:$4 sm:$0xff]  }
  0xaa   : > { %1267 = vmatmul.mubr.bf16.gmra.mxu0 %v2300_v51  ;;  %1556 = vmatmul.mubr.bf16.gmra.mxu1 %v2301_v52  ;;  %v2396_v51 = vld [vmem:[#allocation5 + $0x280] ss:$16 sps:$4 sm:$0xff]   ;;  %v2397_v52 = vld [vmem:[#allocation5 + $0x288] ss:$16 sps:$4 sm:$0xff]  }
  0xab   : > { %1274 = vmatprep.mubr.bf16.mxu0 %v2302_v53  ;;  %1563 = vmatprep.mubr.bf16.mxu1 %v2304_v54  ;;  %v2398_v53 = vld [vmem:[#allocation5 + $0x2a4] ss:$16 sps:$4 sm:$0xff]   ;;  %v2400_v54 = vld [vmem:[#allocation5 + $0x2ac] ss:$16 sps:$4 sm:$0xff]  }
  0xb2   : > { %1275 = vmatmul.mubr.bf16.gmra.mxu0 %v2306_v55  ;;  %1564 = vmatmul.mubr.bf16.gmra.mxu1 %v2307_v56  ;;  %v2402_v55 = vld [vmem:[#allocation5 + $0x2a0] ss:$16 sps:$4 sm:$0xff]   ;;  %v2403_v56 = vld [vmem:[#allocation5 + $0x2a8] ss:$16 sps:$4 sm:$0xff]  }
  0xb3   : > { %1282 = vmatprep.mubr.bf16.mxu0 %v2308_v57  ;;  %1571 = vmatprep.mubr.bf16.mxu1 %v2310_v58  ;;  %v2404_v57 = vld [vmem:[#allocation5 + $0x2c4] ss:$16 sps:$4 sm:$0xff]   ;;  %v2406_v58 = vld [vmem:[#allocation5 + $0x2cc] ss:$16 sps:$4 sm:$0xff]  }
  0xba   : > { %1283 = vmatmul.mubr.bf16.gmra.mxu0 %v2312_v59  ;;  %1572 = vmatmul.mubr.bf16.gmra.mxu1 %v2313_v60  ;;  %v2408_v59 = vld [vmem:[#allocation5 + $0x2c0] ss:$16 sps:$4 sm:$0xff]   ;;  %v2409_v60 = vld [vmem:[#allocation5 + $0x2c8] ss:$16 sps:$4 sm:$0xff]  }
  0xbb   : > { %1290 = vmatprep.mubr.bf16.mxu0 %v2314_v61  ;;  %1579 = vmatprep.mubr.bf16.mxu1 %v2316_v62  ;;  %v2410_v61 = vld [vmem:[#allocation5 + $0x2e4] ss:$16 sps:$4 sm:$0xff]   ;;  %v2412_v62 = vld [vmem:[#allocation5 + $0x2ec] ss:$16 sps:$4 sm:$0xff]  }
  0xc2   : > { %1291 = vmatmul.mubr.bf16.gmra.mxu0 %v2318_v63  ;;  %1580 = vmatmul.mubr.bf16.gmra.mxu1 %v2319_v0  ;;  %v2414_v63 = vld [vmem:[#allocation5 + $0x2e0] ss:$16 sps:$4 sm:$0xff]   ;;  %v2415_v0 = vld [vmem:[#allocation5 + $0x2e8] ss:$16 sps:$4 sm:$0xff]  }
  0xc3   : > { %1298 = vmatprep.mubr.bf16.mxu0 %v2320_v1  ;;  %1587 = vmatprep.mubr.bf16.mxu1 %v2322_v2  ;;  %v2416_v1 = vld [vmem:[#allocation5 + $0x304] ss:$16 sps:$4 sm:$0xff]   ;;  %v2418_v2 = vld [vmem:[#allocation5 + $0x30c] ss:$16 sps:$4 sm:$0xff]  }
  0xca   : > { %1299 = vmatmul.mubr.bf16.gmra.mxu0 %v2324_v3  ;;  %1588 = vmatmul.mubr.bf16.gmra.mxu1 %v2325_v4  ;;  %v2420_v3 = vld [vmem:[#allocation5 + $0x300] ss:$16 sps:$4 sm:$0xff]   ;;  %v2421_v4 = vld [vmem:[#allocation5 + $0x308] ss:$16 sps:$4 sm:$0xff]  }
  0xcb   : > { %1306 = vmatprep.mubr.bf16.mxu0 %v2326_v5  ;;  %1595 = vmatprep.mubr.bf16.mxu1 %v2328_v6  ;;  %v2422_v5 = vld [vmem:[#allocation5 + $0x324] ss:$16 sps:$4 sm:$0xff]   ;;  %v2424_v6 = vld [vmem:[#allocation5 + $0x32c] ss:$16 sps:$4 sm:$0xff]  }
  0xd2   : > { %1307 = vmatmul.mubr.bf16.gmra.mxu0 %v2330_v7  ;;  %1596 = vmatmul.mubr.bf16.gmra.mxu1 %v2331_v8 }
  0xd3   : > { %1314 = vmatprep.mubr.bf16.mxu0 %v2332_v9  ;;  %1603 = vmatprep.mubr.bf16.mxu1 %v2334_v10 }
  0xda   : > { %1315 = vmatmul.mubr.bf16.gmra.mxu0 %v2336_v11  ;;  %1604 = vmatmul.mubr.bf16.gmra.mxu1 %v2337_v12 }
  0xdb   : > { %1322 = vmatprep.mubr.bf16.mxu0 %v2338_v13  ;;  %1611 = vmatprep.mubr.bf16.mxu1 %v2340_v14  ;;  %v2426_v13 = vld [vmem:[#allocation5 + $0x320] ss:$16 sps:$4 sm:$0xff]  }
  0xe2   : > { %1323 = vmatmul.mubr.bf16.gmra.mxu0 %v2342_v15  ;;  %1612 = vmatmul.mubr.bf16.gmra.mxu1 %v2343_v16  ;;  %v2427_v15 = vld [vmem:[#allocation5 + $0x328] ss:$16 sps:$4 sm:$0xff]   ;;  %v2428_v16 = vld [vmem:[#allocation5 + $0x344] ss:$16 sps:$4 sm:$0xff]  }
  0xe3   : > { %1330 = vmatprep.mubr.bf16.mxu0 %v2344_v17  ;;  %1619 = vmatprep.mubr.bf16.mxu1 %v2346_v18 }
  0xea   : > { %1331 = vmatmul.mubr.bf16.gmra.mxu0 %v2348_v19  ;;  %1620 = vmatmul.mubr.bf16.gmra.mxu1 %v2349_v20  ;;  %v2430_v19 = vld [vmem:[#allocation5 + $0x34c] ss:$16 sps:$4 sm:$0xff]  }
  0xeb   : > { %1338 = vmatprep.mubr.bf16.mxu0 %v2350_v21  ;;  %1627 = vmatprep.mubr.bf16.mxu1 %v2352_v22 }
  0xf2   : > { %1339 = vmatmul.mubr.bf16.gmra.mxu0 %v2354_v23  ;;  %1628 = vmatmul.mubr.bf16.gmra.mxu1 %v2355_v24 }
  0xf3   : > { %1346 = vmatprep.mubr.bf16.mxu0 %v2356_v25  ;;  %1635 = vmatprep.mubr.bf16.mxu1 %v2358_v26 }
  0xfa   : > { %1347 = vmatmul.mubr.bf16.gmra.mxu0 %v2360_v27  ;;  %1636 = vmatmul.mubr.bf16.gmra.mxu1 %v2361_v28 }
  0xfb   : > { %1354 = vmatprep.mubr.bf16.mxu0 %v2362_v29  ;;  %1643 = vmatprep.mubr.bf16.mxu1 %v2364_v30  ;;  %v2432_v29 = vld [vmem:[#allocation5 + $0x340] ss:$16 sps:$4 sm:$0xff]  }
 0x102   : > { %1355 = vmatmul.mubr.bf16.gmra.mxu0 %v2366_v31  ;;  %1644 = vmatmul.mubr.bf16.gmra.mxu1 %v2367_v32  ;;  %v2433_v31 = vld [vmem:[#allocation5 + $0x348] ss:$16 sps:$4 sm:$0xff]   ;;  %v2434_v32 = vld [vmem:[#allocation5 + $0x364] ss:$16 sps:$4 sm:$0xff]  }
 0x103   : > { %1362 = vmatprep.mubr.bf16.mxu0 %v2368_v33  ;;  %1651 = vmatprep.mubr.bf16.mxu1 %v2370_v34 }
 0x10a   : > { %1363 = vmatmul.mubr.bf16.gmra.mxu0 %v2372_v35  ;;  %1652 = vmatmul.mubr.bf16.gmra.mxu1 %v2373_v36  ;;  %v2436_v35 = vld [vmem:[#allocation5 + $0x36c] ss:$16 sps:$4 sm:$0xff]  }
 0x10b   : > { %1370 = vmatprep.mubr.bf16.mxu0 %v2374_v37  ;;  %1659 = vmatprep.mubr.bf16.mxu1 %v2376_v38 }
 0x112   : > { %1371 = vmatmul.mubr.bf16.gmra.mxu0 %v2378_v39  ;;  %1660 = vmatmul.mubr.bf16.gmra.mxu1 %v2379_v40 }
 0x113   : > { %1378 = vmatprep.mubr.bf16.mxu0 %v2380_v41  ;;  %1667 = vmatprep.mubr.bf16.mxu1 %v2382_v42 }
 0x11a   : > { %1379 = vmatmul.mubr.bf16.gmra.mxu0 %v2384_v43  ;;  %1668 = vmatmul.mubr.bf16.gmra.mxu1 %v2385_v44 }
 0x11b   : > { %1386 = vmatprep.mubr.bf16.mxu0 %v2386_v45  ;;  %1675 = vmatprep.mubr.bf16.mxu1 %v2388_v46  ;;  %v2438_v45 = vld [vmem:[#allocation5 + $0x360] ss:$16 sps:$4 sm:$0xff]  }
 0x122   : > { %1387 = vmatmul.mubr.bf16.gmra.mxu0 %v2390_v47  ;;  %1676 = vmatmul.mubr.bf16.gmra.mxu1 %v2391_v48  ;;  %v2439_v47 = vld [vmem:[#allocation5 + $0x368] ss:$16 sps:$4 sm:$0xff]   ;;  %v2442_v48 = vld [vmem:[#allocation5 + $0x384] ss:$16 sps:$4 sm:$0xff]  }
 0x123   : > { %1394 = vmatprep.mubr.bf16.mxu0 %v2392_v49  ;;  %1683 = vmatprep.mubr.bf16.mxu1 %v2394_v50 }
 0x12a   : > { %1395 = vmatmul.mubr.bf16.gmra.mxu0 %v2396_v51  ;;  %1684 = vmatmul.mubr.bf16.gmra.mxu1 %v2397_v52  ;;  %v2445_v51 = vld [vmem:[#allocation5 + $0x38c] ss:$16 sps:$4 sm:$0xff]  }
 0x12b   : > { %1402 = vmatprep.mubr.bf16.mxu0 %v2398_v53  ;;  %1691 = vmatprep.mubr.bf16.mxu1 %v2400_v54 }
 0x132   : > { %1403 = vmatmul.mubr.bf16.gmra.mxu0 %v2402_v55  ;;  %1692 = vmatmul.mubr.bf16.gmra.mxu1 %v2403_v56 }
 0x133   : > { %1410 = vmatprep.mubr.bf16.mxu0 %v2404_v57  ;;  %1699 = vmatprep.mubr.bf16.mxu1 %v2406_v58 }
 0x13a   : > { %1411 = vmatmul.mubr.bf16.gmra.mxu0 %v2408_v59  ;;  %1700 = vmatmul.mubr.bf16.gmra.mxu1 %v2409_v60 }
 0x13b   : > { %1418 = vmatprep.mubr.bf16.mxu0 %v2410_v61  ;;  %1707 = vmatprep.mubr.bf16.mxu1 %v2412_v62  ;;  %v2440_v61 = vld [vmem:[#allocation5 + $0x380] ss:$16 sps:$4 sm:$0xff]  }
 0x142   : > { %1419 = vmatmul.mubr.bf16.gmra.mxu0 %v2414_v63  ;;  %1708 = vmatmul.mubr.bf16.gmra.mxu1 %v2415_v0  ;;  %v2443_v63 = vld [vmem:[#allocation5 + $0x388] ss:$16 sps:$4 sm:$0xff]   ;;  %v2448_v0 = vld [vmem:[#allocation5 + $0x3a4] ss:$16 sps:$4 sm:$0xff]  }
 0x143   : > { %1426 = vmatprep.mubr.bf16.mxu0 %v2416_v1  ;;  %1715 = vmatprep.mubr.bf16.mxu1 %v2418_v2 }
 0x14a   : > { %v1236_v7 = vpop.f32.mrf.mxu0  ;;  %1427 = vmatmul.mubr.bf16.gmra.mxu0 %v2420_v3  ;;  %v1525_v8 = vpop.f32.mrf.mxu1  ;;  %1716 = vmatmul.mubr.bf16.gmra.mxu1 %v2421_v4  ;;  %v2451_v3 = vld [vmem:[#allocation5 + $0x3ac] ss:$16 sps:$4 sm:$0xff]  }
 0x14b   : > { %1434 = vmatprep.mubr.bf16.mxu0 %v2422_v5  ;;  %v1526_v9 = vadd.f32 %v1525_v8, %v1236_v7  ;;  %1723 = vmatprep.mubr.bf16.mxu1 %v2424_v6 }
 0x14c   : > { %v1238_v10 = vpop.f32.mrf.mxu0  ;;  %v1527_v11 = vpop.f32.mrf.mxu1 }
 0x14e   : > { %v1239_v12 = vpop.f32.mrf.mxu0  ;;  %v1528_v14 = vpop.f32.mrf.mxu1 }
 0x14f   : > { %v1529_v17 = vadd.f32 %v1528_v14, %v1239_v12  ;;  %v2446_v12 = vld [vmem:[#allocation5 + $0x3a0] ss:$16 sps:$4 sm:$0xff]   ;;  %v2449_v14 = vld [vmem:[#allocation5 + $0x3a8] ss:$16 sps:$4 sm:$0xff]  }
 0x150   : > { %v1241_v18 = vpop.f32.mrf.mxu0  ;;  %v1530_v20 = vpop.f32.mrf.mxu1 }
 0x151   : > { %v1780_v21 = vmax.f32 %v1526_v9, %v1529_v17  ;;  %v2457_v18 = vld [vmem:[#allocation5 + $0x3cc] ss:$16 sps:$4 sm:$0xff]  }
 0x152   : > { %v1244_v22 = vpop.f32.mrf.mxu0  ;;  %1435 = vmatmul.mubr.bf16.gmra.mxu0 %v2426_v13  ;;  %v1533_v23 = vpop.f32.mrf.mxu1  ;;  %1724 = vmatmul.mubr.bf16.gmra.mxu1 %v2427_v15  ;;  %v2454_v15 = vld [vmem:[#allocation5 + $0x3c4] ss:$16 sps:$4 sm:$0xff]  }
 0x153   : > { %1442 = vmatprep.mubr.bf16.mxu0 %v2428_v16  ;;  %v1534_v24 = vadd.f32 %v1533_v23, %v1244_v22  ;;  %1731 = vmatprep.mubr.bf16.mxu1 %v2430_v19 }
 0x154   : > { %v1246_v25 = vpop.f32.mrf.mxu0  ;;  %v1535_v26 = vpop.f32.mrf.mxu1 }
 0x155   : > { %v1781_v27 = vmax.f32 %v1780_v21, %v1534_v24 }
 0x156   : > { %v1247_v28 = vpop.f32.mrf.mxu0  ;;  %v1536_v30 = vpop.f32.mrf.mxu1 }
 0x157   : > { %v1537_v33 = vadd.f32 %v1536_v30, %v1247_v28  ;;  %v2452_v28 = vld [vmem:[#allocation5 + $0x3c0] ss:$16 sps:$4 sm:$0xff]   ;;  %v2455_v30 = vld [vmem:[#allocation5 + $0x3c8] ss:$16 sps:$4 sm:$0xff]  }
 0x158   : > { %v1249_v34 = vpop.f32.mrf.mxu0  ;;  %v1538_v36 = vpop.f32.mrf.mxu1 }
 0x159   : > { %v1782_v37 = vmax.f32 %v1781_v27, %v1537_v33  ;;  %v2463_v34 = vld [vmem:[#allocation5 + $0x3ec] ss:$16 sps:$4 sm:$0xff]  }
 0x15a   : > { %v1252_v38 = vpop.f32.mrf.mxu0  ;;  %1443 = vmatmul.mubr.bf16.gmra.mxu0 %v2432_v29  ;;  %v1541_v39 = vpop.f32.mrf.mxu1  ;;  %1732 = vmatmul.mubr.bf16.gmra.mxu1 %v2433_v31  ;;  %v2460_v31 = vld [vmem:[#allocation5 + $0x3e4] ss:$16 sps:$4 sm:$0xff]  }
 0x15b   : > { %1450 = vmatprep.mubr.bf16.mxu0 %v2434_v32  ;;  %v1542_v40 = vadd.f32 %v1541_v39, %v1252_v38  ;;  %1739 = vmatprep.mubr.bf16.mxu1 %v2436_v35 }
 0x15c   : > { %v1254_v41 = vpop.f32.mrf.mxu0  ;;  %v1543_v42 = vpop.f32.mrf.mxu1 }
 0x15d   : > { %v1783_v43 = vmax.f32 %v1782_v37, %v1542_v40 }
 0x15e   : > { %v1255_v44 = vpop.f32.mrf.mxu0  ;;  %v1544_v46 = vpop.f32.mrf.mxu1 }
 0x15f   : > { %v1545_v49 = vadd.f32 %v1544_v46, %v1255_v44  ;;  %v2458_v44 = vld [vmem:[#allocation5 + $0x3e0] ss:$16 sps:$4 sm:$0xff]   ;;  %v2461_v46 = vld [vmem:[#allocation5 + $0x3e8] ss:$16 sps:$4 sm:$0xff]  }
 0x160   : > { %v1257_v50 = vpop.f32.mrf.mxu0  ;;  %v1546_v52 = vpop.f32.mrf.mxu1 }
 0x161   : > { %v1784_v53 = vmax.f32 %v1783_v43, %v1545_v49 }
 0x162   : > { %v1260_v54 = vpop.f32.mrf.mxu0  ;;  %1451 = vmatmul.mubr.bf16.gmra.mxu0 %v2438_v45  ;;  %v1549_v55 = vpop.f32.mrf.mxu1  ;;  %1740 = vmatmul.mubr.bf16.gmra.mxu1 %v2439_v47 }
 0x163   : > { %1458 = vmatprep.mubr.bf16.mxu0 %v2442_v48  ;;  %v1550_v56 = vadd.f32 %v1549_v55, %v1260_v54  ;;  %1747 = vmatprep.mubr.bf16.mxu1 %v2445_v51 }
 0x164   : > { %v1262_v57 = vpop.f32.mrf.mxu0  ;;  %v1551_v58 = vpop.f32.mrf.mxu1 }
 0x165   : > { %v1785_v59 = vmax.f32 %v1784_v53, %v1550_v56 }
 0x166   : > { %v1263_v60 = vpop.f32.mrf.mxu0  ;;  %v1552_v62 = vpop.f32.mrf.mxu1 }
 0x167   : > { %v1553_v1 = vadd.f32 %v1552_v62, %v1263_v60 }
 0x168   : > { %v1265_v2 = vpop.f32.mrf.mxu0  ;;  %v1554_v4 = vpop.f32.mrf.mxu1 }
 0x169   : > { %v2804_v5 = vmax.f32 %v1785_v59, %v1553_v1 }
 0x16a   : > { %v1268_v6 = vpop.f32.mrf.mxu0  ;;  %1459 = vmatmul.mubr.bf16.gmra.mxu0 %v2440_v61  ;;  %v1557_v7 = vpop.f32.mrf.mxu1  ;;  %1748 = vmatmul.mubr.bf16.gmra.mxu1 %v2443_v63 }
 0x16b   : > { %1466 = vmatprep.mubr.bf16.mxu0 %v2448_v0  ;;  %v1558_v8 = vadd.f32 %v1557_v7, %v1268_v6  ;;  %1755 = vmatprep.mubr.bf16.mxu1 %v2451_v3  ;;  %v1787_v50 = vrot.slane %v2804_v5, 4 }
 0x16c   : > { %v1270_v9 = vpop.f32.mrf.mxu0  ;;  %v1559_v10 = vpop.f32.mrf.mxu1 }
 0x16d   : > { %v1788_v57 = vmax.f32 %v2804_v5, %v1787_v50 }
 0x16e   : > { %v1271_v11 = vpop.f32.mrf.mxu0  ;;  %v1560_v13 = vpop.f32.mrf.mxu1 }
 0x16f   : > { %v1561_v16 = vadd.f32 %v1560_v13, %v1271_v11  ;;  %v1789_v0 = vrot.slane %v1788_v57, 2 }
 0x170   : > { %v1273_v17 = vpop.f32.mrf.mxu0  ;;  %v1562_v19 = vpop.f32.mrf.mxu1 }
 0x171   : > { %v1793_v20 = vmax.f32 %v1558_v8, %v1561_v16  ;;  %v1790_v9 = vmax.f32 %v1788_v57, %v1789_v0 }
 0x172   : > { %v1276_v21 = vpop.f32.mrf.mxu0  ;;  %1467 = vmatmul.mubr.bf16.gmra.mxu0 %v2446_v12  ;;  %v1565_v22 = vpop.f32.mrf.mxu1  ;;  %1756 = vmatmul.mubr.bf16.gmra.mxu1 %v2449_v14 }
 0x173   : > { %1474 = vmatprep.mubr.bf16.mxu0 %v2454_v15  ;;  %v1566_v23 = vadd.f32 %v1565_v22, %v1276_v21  ;;  %1763 = vmatprep.mubr.bf16.mxu1 %v2457_v18  ;;  %v1791_v16 = vrot.slane %v1790_v9, 1 }
 0x174   : > { %v1278_v24 = vpop.f32.mrf.mxu0  ;;  %v1567_v25 = vpop.f32.mrf.mxu1 }
 0x175   : > { %v1794_v26 = vmax.f32 %v1793_v20, %v1566_v23  ;;  %v1792_v25 = vmax.f32 %v1790_v9, %v1791_v16 }
 0x176   : > { %v1279_v27 = vpop.f32.mrf.mxu0  ;;  %v1568_v29 = vpop.f32.mrf.mxu1 }
 0x177   : > { %v1569_v32 = vadd.f32 %v1568_v29, %v1279_v27 }
 0x178   : > { %v1281_v33 = vpop.f32.mrf.mxu0  ;;  %v1570_v35 = vpop.f32.mrf.mxu1 }
 0x179   : > { %v1795_v36 = vmax.f32 %v1794_v26, %v1569_v32 }
 0x17a   : > { %v1284_v37 = vpop.f32.mrf.mxu0  ;;  %1475 = vmatmul.mubr.bf16.gmra.mxu0 %v2452_v28  ;;  %v1573_v38 = vpop.f32.mrf.mxu1  ;;  %1764 = vmatmul.mubr.bf16.gmra.mxu1 %v2455_v30 }
 0x17b   : > { %1482 = vmatprep.mubr.bf16.mxu0 %v2460_v31  ;;  %v1574_v39 = vadd.f32 %v1573_v38, %v1284_v37  ;;  %1771 = vmatprep.mubr.bf16.mxu1 %v2463_v34 }
 0x17c   : > { %v1286_v40 = vpop.f32.mrf.mxu0  ;;  %v1575_v41 = vpop.f32.mrf.mxu1 }
 0x17d   : > { %v1796_v42 = vmax.f32 %v1795_v36, %v1574_v39 }
 0x17e   : > { %v1287_v43 = vpop.f32.mrf.mxu0  ;;  %v1576_v45 = vpop.f32.mrf.mxu1 }
 0x17f   : > { %v1577_v47 = vadd.f32 %v1576_v45, %v1287_v43 }
 0x180   : > { %v1289_v48 = vpop.f32.mrf.mxu0  ;;  %v1578_v49 = vpop.f32.mrf.mxu1 }
 0x181   : > { %v1797_v51 = vmax.f32 %v1796_v42, %v1577_v47 }
 0x182   : > { %v1292_v52 = vpop.f32.mrf.mxu0  ;;  %1483 = vmatmul.mubr.bf16.gmra.mxu0 %v2458_v44  ;;  %v1581_v53 = vpop.f32.mrf.mxu1  ;;  %1772 = vmatmul.mubr.bf16.gmra.mxu1 %v2461_v46 }
 0x183   : > { %v1582_v54 = vadd.f32 %v1581_v53, %v1292_v52 }
 0x184   : > { %v1294_v55 = vpop.f32.mrf.mxu0  ;;  %v1583_v56 = vpop.f32.mrf.mxu1 }
 0x185   : > { %v1798_v58 = vmax.f32 %v1797_v51, %v1582_v54 }
 0x186   : > { %v1295_v59 = vpop.f32.mrf.mxu0  ;;  %v1584_v60 = vpop.f32.mrf.mxu1 }
 0x187   : > { %v1585_v61 = vadd.f32 %v1584_v60, %v1295_v59 }
 0x188   : > { %v1297_v62 = vpop.f32.mrf.mxu0  ;;  %v1586_v63 = vpop.f32.mrf.mxu1 }
 0x189   : > { %v1799_v1 = vmax.f32 %v1798_v58, %v1585_v61 }
 0x18a   : > { %v1300_v2 = vpop.f32.mrf.mxu0  ;;  %v1589_v3 = vpop.f32.mrf.mxu1 }
 0x18b   : > { %v1800_v4 = vrot.slane %v1799_v1, 4  ;;  %v1590_v6 = vadd.f32 %v1589_v3, %v1300_v2 }
 0x18c   : > { %v1302_v7 = vpop.f32.mrf.mxu0  ;;  %v1591_v8 = vpop.f32.mrf.mxu1 }
 0x18d   : > { %v1801_v10 = vmax.f32 %v1799_v1, %v1800_v4 }
 0x18e   : > { %v1303_v11 = vpop.f32.mrf.mxu0  ;;  %v1592_v12 = vpop.f32.mrf.mxu1 }
 0x18f   : > { %v1802_v13 = vrot.slane %v1801_v10, 2  ;;  %v1593_v5 = vadd.f32 %v1592_v12, %v1303_v11 }
 0x190   : > { %v1305_v14 = vpop.f32.mrf.mxu0  ;;  %v1594_v15 = vpop.f32.mrf.mxu1 }
 0x191   : > { %v1803_v17 = vmax.f32 %v1801_v10, %v1802_v13  ;;  %v1806_v18 = vmax.f32 %v1590_v6, %v1593_v5 }
 0x192   : > { %v1308_v19 = vpop.f32.mrf.mxu0  ;;  %v1597_v20 = vpop.f32.mrf.mxu1 }
 0x193   : > { %v1804_v21 = vrot.slane %v1803_v17, 1  ;;  %v1598_v22 = vadd.f32 %v1597_v20, %v1308_v19 }
 0x194   : > { %v1310_v23 = vpop.f32.mrf.mxu0  ;;  %v1599_v24 = vpop.f32.mrf.mxu1 }
 0x195   : > { %v1805_v26 = vmax.f32 %v1803_v17, %v1804_v21  ;;  %v1807_v27 = vmax.f32 %v1806_v18, %v1598_v22 }
 0x196   : > { %v1311_v28 = vpop.f32.mrf.mxu0  ;;  %v1600_v29 = vpop.f32.mrf.mxu1 }
 0x197   : > { %v1893_v30 = vsel %vm1892_vm0, %v1805_v26, %v1792_v25  ;;  %v1601_v31 = vadd.f32 %v1600_v29, %v1311_v28 }
 0x198   : > { %v1313_v32 = vpop.f32.mrf.mxu0  ;;  %v1602_v33 = vpop.f32.mrf.mxu1 }
 0x199   : > { %v1808_v34 = vmax.f32 %v1807_v27, %v1601_v31 }
 0x19a   : > { %v1316_v35 = vpop.f32.mrf.mxu0  ;;  %v1605_v36 = vpop.f32.mrf.mxu1 }
 0x19b   : > { %v1606_v37 = vadd.f32 %v1605_v36, %v1316_v35 }
 0x19c   : > { %v1318_v38 = vpop.f32.mrf.mxu0  ;;  %v1607_v39 = vpop.f32.mrf.mxu1 }
 0x19d   : > { %v1809_v40 = vmax.f32 %v1808_v34, %v1606_v37 }
 0x19e   : > { %v1319_v41 = vpop.f32.mrf.mxu0  ;;  %v1608_v42 = vpop.f32.mrf.mxu1 }
 0x19f   : > { %v1609_v43 = vadd.f32 %v1608_v42, %v1319_v41 }
 0x1a0   : > { %v1321_v44 = vpop.f32.mrf.mxu0  ;;  %v1610_v45 = vpop.f32.mrf.mxu1 }
 0x1a1   : > { %v1810_v46 = vmax.f32 %v1809_v40, %v1609_v43 }
 0x1a2   : > { %v1324_v47 = vpop.f32.mrf.mxu0  ;;  %v1613_v48 = vpop.f32.mrf.mxu1 }
 0x1a3   : > { %v1614_v49 = vadd.f32 %v1613_v48, %v1324_v47 }
 0x1a4   : > { %v1326_v50 = vpop.f32.mrf.mxu0  ;;  %v1615_v51 = vpop.f32.mrf.mxu1 }
 0x1a5   : > { %v1811_v52 = vmax.f32 %v1810_v46, %v1614_v49 }
 0x1a6   : > { %v1327_v53 = vpop.f32.mrf.mxu0  ;;  %v1616_v54 = vpop.f32.mrf.mxu1 }
 0x1a7   : > { %v1617_v55 = vadd.f32 %v1616_v54, %v1327_v53 }
 0x1a8   : > { %v1329_v56 = vpop.f32.mrf.mxu0  ;;  %v1618_v57 = vpop.f32.mrf.mxu1 }
 0x1a9   : > { %v1812_v58 = vmax.f32 %v1811_v52, %v1617_v55 }
 0x1aa   : > { %v1332_v59 = vpop.f32.mrf.mxu0  ;;  %v1621_v60 = vpop.f32.mrf.mxu1 }
 0x1ab   : > { %v1813_v61 = vrot.slane %v1812_v58, 4  ;;  %v1622_v62 = vadd.f32 %v1621_v60, %v1332_v59 }
 0x1ac   : > { %v1334_v63 = vpop.f32.mrf.mxu0  ;;  %v1623_v0 = vpop.f32.mrf.mxu1 }
 0x1ad   : > { %v1814_v1 = vmax.f32 %v1812_v58, %v1813_v61 }
 0x1ae   : > { %v1335_v2 = vpop.f32.mrf.mxu0  ;;  %v1624_v3 = vpop.f32.mrf.mxu1 }
 0x1af   : > { %v1815_v4 = vrot.slane %v1814_v1, 2  ;;  %v1625_v6 = vadd.f32 %v1624_v3, %v1335_v2 }
 0x1b0   : > { %v1337_v7 = vpop.f32.mrf.mxu0  ;;  %v1626_v8 = vpop.f32.mrf.mxu1 }
 0x1b1   : > { %v1816_v9 = vmax.f32 %v1814_v1, %v1815_v4  ;;  %v1819_v10 = vmax.f32 %v1622_v62, %v1625_v6 }
 0x1b2   : > { %v1340_v11 = vpop.f32.mrf.mxu0  ;;  %v1629_v12 = vpop.f32.mrf.mxu1 }
 0x1b3   : > { %v1817_v13 = vrot.slane %v1816_v9, 1  ;;  %v1630_v5 = vadd.f32 %v1629_v12, %v1340_v11 }
 0x1b4   : > { %v1342_v14 = vpop.f32.mrf.mxu0  ;;  %v1631_v15 = vpop.f32.mrf.mxu1 }
 0x1b5   : > { %v1818_v16 = vmax.f32 %v1816_v9, %v1817_v13  ;;  %v1820_v17 = vmax.f32 %v1819_v10, %v1630_v5 }
 0x1b6   : > { %v1343_v18 = vpop.f32.mrf.mxu0  ;;  %v1632_v19 = vpop.f32.mrf.mxu1 }
 0x1b7   : > { %v1895_v20 = vsel %vm1894_vm1, %v1818_v16, %v1893_v30  ;;  %v1633_v21 = vadd.f32 %v1632_v19, %v1343_v18 }
 0x1b8   : > { %v1345_v22 = vpop.f32.mrf.mxu0  ;;  %v1634_v23 = vpop.f32.mrf.mxu1 }
 0x1b9   : > { %v1821_v24 = vmax.f32 %v1820_v17, %v1633_v21 }
 0x1ba   : > { %v1348_v25 = vpop.f32.mrf.mxu0  ;;  %v1637_v26 = vpop.f32.mrf.mxu1 }
 0x1bb   : > { %v1638_v27 = vadd.f32 %v1637_v26, %v1348_v25 }
 0x1bc   : > { %v1350_v28 = vpop.f32.mrf.mxu0  ;;  %v1639_v29 = vpop.f32.mrf.mxu1 }
 0x1bd   : > { %v1822_v31 = vmax.f32 %v1821_v24, %v1638_v27 }
 0x1be   : > { %v1351_v32 = vpop.f32.mrf.mxu0  ;;  %v1640_v33 = vpop.f32.mrf.mxu1 }
 0x1bf   : > { %v1641_v34 = vadd.f32 %v1640_v33, %v1351_v32 }
 0x1c0   : > { %v1353_v35 = vpop.f32.mrf.mxu0  ;;  %v1642_v36 = vpop.f32.mrf.mxu1 }
 0x1c1   : > { %v1823_v37 = vmax.f32 %v1822_v31, %v1641_v34 }
 0x1c2   : > { %v1356_v38 = vpop.f32.mrf.mxu0  ;;  %v1645_v39 = vpop.f32.mrf.mxu1 }
 0x1c3   : > { %v1646_v40 = vadd.f32 %v1645_v39, %v1356_v38 }
 0x1c4   : > { %v1358_v30 = vpop.f32.mrf.mxu0  ;;  %v1647_v41 = vpop.f32.mrf.mxu1 }
 0x1c5   : > { %v1824_v42 = vmax.f32 %v1823_v37, %v1646_v40 }
 0x1c6   : > { %v1359_v43 = vpop.f32.mrf.mxu0  ;;  %v1648_v44 = vpop.f32.mrf.mxu1 }
 0x1c7   : > { %v1649_v45 = vadd.f32 %v1648_v44, %v1359_v43 }
 0x1c8   : > { %v1361_v46 = vpop.f32.mrf.mxu0  ;;  %v1650_v47 = vpop.f32.mrf.mxu1 }
 0x1c9   : > { %v1825_v48 = vmax.f32 %v1824_v42, %v1649_v45 }
 0x1ca   : > { %v1364_v49 = vpop.f32.mrf.mxu0  ;;  %v1653_v50 = vpop.f32.mrf.mxu1 }
 0x1cb   : > { %v1826_v51 = vrot.slane %v1825_v48, 4  ;;  %v1654_v52 = vadd.f32 %v1653_v50, %v1364_v49 }
 0x1cc   : > { %v1366_v53 = vpop.f32.mrf.mxu0  ;;  %v1655_v54 = vpop.f32.mrf.mxu1 }
 0x1cd   : > { %v1827_v55 = vmax.f32 %v1825_v48, %v1826_v51 }
 0x1ce   : > { %v1367_v56 = vpop.f32.mrf.mxu0  ;;  %v1656_v57 = vpop.f32.mrf.mxu1 }
 0x1cf   : > { %v1828_v58 = vrot.slane %v1827_v55, 2  ;;  %v1657_v59 = vadd.f32 %v1656_v57, %v1367_v56 }
 0x1d0   : > { %v1369_v60 = vpop.f32.mrf.mxu0  ;;  %v1658_v61 = vpop.f32.mrf.mxu1 }
 0x1d1   : > { %v1829_v62 = vmax.f32 %v1827_v55, %v1828_v58  ;;  %v1832_v63 = vmax.f32 %v1654_v52, %v1657_v59 }
 0x1d2   : > { %v1372_v0 = vpop.f32.mrf.mxu0  ;;  %v1661_v1 = vpop.f32.mrf.mxu1 }
 0x1d3   : > { %v1830_v2 = vrot.slane %v1829_v62, 1  ;;  %v1662_v3 = vadd.f32 %v1661_v1, %v1372_v0 }
 0x1d4   : > { %v1374_v4 = vpop.f32.mrf.mxu0  ;;  %v1663_v6 = vpop.f32.mrf.mxu1 }
 0x1d5   : > { %v1831_v7 = vmax.f32 %v1829_v62, %v1830_v2  ;;  %v1833_v8 = vmax.f32 %v1832_v63, %v1662_v3 }
 0x1d6   : > { %v1375_v9 = vpop.f32.mrf.mxu0  ;;  %v1664_v10 = vpop.f32.mrf.mxu1 }
 0x1d7   : > { %v1897_v11 = vsel %vm1896_vm2, %v1831_v7, %v1895_v20  ;;  %v1665_v12 = vadd.f32 %v1664_v10, %v1375_v9 }
 0x1d8   : > { %v1377_v13 = vpop.f32.mrf.mxu0  ;;  %v1666_v5 = vpop.f32.mrf.mxu1 }
 0x1d9   : > { %v1834_v14 = vmax.f32 %v1833_v8, %v1665_v12 }
 0x1da   : > { %v1380_v15 = vpop.f32.mrf.mxu0  ;;  %v1669_v16 = vpop.f32.mrf.mxu1 }
 0x1db   : > { %v1670_v17 = vadd.f32 %v1669_v16, %v1380_v15 }
 0x1dc   : > { %v1382_v18 = vpop.f32.mrf.mxu0  ;;  %v1671_v19 = vpop.f32.mrf.mxu1 }
 0x1dd   : > { %v1835_v21 = vmax.f32 %v1834_v14, %v1670_v17 }
 0x1de   : > { %v1383_v22 = vpop.f32.mrf.mxu0  ;;  %v1672_v23 = vpop.f32.mrf.mxu1 }
 0x1df   : > { %v1673_v24 = vadd.f32 %v1672_v23, %v1383_v22 }
 0x1e0   : > { %v1385_v25 = vpop.f32.mrf.mxu0  ;;  %v1674_v26 = vpop.f32.mrf.mxu1 }
 0x1e1   : > { %v1836_v27 = vmax.f32 %v1835_v21, %v1673_v24 }
 0x1e2   : > { %v1388_v28 = vpop.f32.mrf.mxu0  ;;  %v1677_v29 = vpop.f32.mrf.mxu1 }
 0x1e3   : > { %v1678_v31 = vadd.f32 %v1677_v29, %v1388_v28 }
 0x1e4   : > { %v1390_v20 = vpop.f32.mrf.mxu0  ;;  %v1679_v32 = vpop.f32.mrf.mxu1 }
 0x1e5   : > { %v1837_v33 = vmax.f32 %v1836_v27, %v1678_v31 }
 0x1e6   : > { %v1391_v34 = vpop.f32.mrf.mxu0  ;;  %v1680_v35 = vpop.f32.mrf.mxu1 }
 0x1e7   : > { %v1681_v36 = vadd.f32 %v1680_v35, %v1391_v34 }
 0x1e8   : > { %v1393_v37 = vpop.f32.mrf.mxu0  ;;  %v1682_v38 = vpop.f32.mrf.mxu1 }
 0x1e9   : > { %v1838_v39 = vmax.f32 %v1837_v33, %v1681_v36 }
 0x1ea   : > { %v1396_v40 = vpop.f32.mrf.mxu0  ;;  %v1685_v30 = vpop.f32.mrf.mxu1 }
 0x1eb   : > { %v1839_v41 = vrot.slane %v1838_v39, 4  ;;  %v1686_v42 = vadd.f32 %v1685_v30, %v1396_v40 }
 0x1ec   : > { %v1398_v43 = vpop.f32.mrf.mxu0  ;;  %v1687_v44 = vpop.f32.mrf.mxu1 }
 0x1ed   : > { %v1840_v45 = vmax.f32 %v1838_v39, %v1839_v41 }
 0x1ee   : > { %v1399_v46 = vpop.f32.mrf.mxu0  ;;  %v1688_v47 = vpop.f32.mrf.mxu1 }
 0x1ef   : > { %v1841_v48 = vrot.slane %v1840_v45, 2  ;;  %v1689_v49 = vadd.f32 %v1688_v47, %v1399_v46 }
 0x1f0   : > { %v1401_v50 = vpop.f32.mrf.mxu0  ;;  %v1690_v51 = vpop.f32.mrf.mxu1 }
 0x1f1   : > { %v1842_v52 = vmax.f32 %v1840_v45, %v1841_v48  ;;  %v1845_v53 = vmax.f32 %v1686_v42, %v1689_v49 }
 0x1f2   : > { %v1404_v54 = vpop.f32.mrf.mxu0  ;;  %v1693_v55 = vpop.f32.mrf.mxu1 }
 0x1f3   : > { %v1843_v56 = vrot.slane %v1842_v52, 1  ;;  %v1694_v57 = vadd.f32 %v1693_v55, %v1404_v54 }
 0x1f4   : > { %v1406_v58 = vpop.f32.mrf.mxu0  ;;  %v1695_v59 = vpop.f32.mrf.mxu1 }
 0x1f5   : > { %v1844_v60 = vmax.f32 %v1842_v52, %v1843_v56  ;;  %v1846_v61 = vmax.f32 %v1845_v53, %v1694_v57 }
 0x1f6   : > { %v1407_v62 = vpop.f32.mrf.mxu0  ;;  %v1696_v63 = vpop.f32.mrf.mxu1 }
 0x1f7   : > { %v1899_v0 = vsel %vm1898_vm3, %v1844_v60, %v1897_v11  ;;  %v1697_v1 = vadd.f32 %v1696_v63, %v1407_v62 }
 0x1f8   : > { %v1409_v2 = vpop.f32.mrf.mxu0  ;;  %v1698_v3 = vpop.f32.mrf.mxu1 }
 0x1f9   : > { %v1847_v4 = vmax.f32 %v1846_v61, %v1697_v1 }
 0x1fa   : > { %v1412_v6 = vpop.f32.mrf.mxu0  ;;  %v1701_v7 = vpop.f32.mrf.mxu1 }
 0x1fb   : > { %v1702_v8 = vadd.f32 %v1701_v7, %v1412_v6 }
 0x1fc   : > { %v1414_v9 = vpop.f32.mrf.mxu0  ;;  %v1703_v10 = vpop.f32.mrf.mxu1 }
 0x1fd   : > { %v1848_v12 = vmax.f32 %v1847_v4, %v1702_v8 }
 0x1fe   : > { %v1415_v13 = vpop.f32.mrf.mxu0  ;;  %v1704_v5 = vpop.f32.mrf.mxu1 }
 0x1ff   : > { %v1705_v14 = vadd.f32 %v1704_v5, %v1415_v13 }
 0x200   : > { %v1417_v15 = vpop.f32.mrf.mxu0  ;;  %v1706_v16 = vpop.f32.mrf.mxu1 }
 0x201   : > { %v1849_v17 = vmax.f32 %v1848_v12, %v1705_v14 }
 0x202   : > { %v1420_v18 = vpop.f32.mrf.mxu0  ;;  %v1709_v19 = vpop.f32.mrf.mxu1 }
 0x203   : > { %v1710_v21 = vadd.f32 %v1709_v19, %v1420_v18 }
 0x204   : > { %v1422_v11 = vpop.f32.mrf.mxu0  ;;  %v1711_v22 = vpop.f32.mrf.mxu1 }
 0x205   : > { %v1850_v23 = vmax.f32 %v1849_v17, %v1710_v21 }
 0x206   : > { %v1423_v24 = vpop.f32.mrf.mxu0  ;;  %v1712_v25 = vpop.f32.mrf.mxu1 }
 0x207   : > { %v1713_v26 = vadd.f32 %v1712_v25, %v1423_v24 }
 0x208   : > { %v1425_v27 = vpop.f32.mrf.mxu0  ;;  %v1714_v28 = vpop.f32.mrf.mxu1 }
 0x209   : > { %v1851_v29 = vmax.f32 %v1850_v23, %v1713_v26 }
 0x20a   : > { %v1428_v31 = vpop.f32.mrf.mxu0  ;;  %v1717_v20 = vpop.f32.mrf.mxu1 }
 0x20b   : > { %v1852_v32 = vrot.slane %v1851_v29, 4  ;;  %v1718_v9 = vadd.f32 %v1717_v20, %v1428_v31 }
 0x20c   : > { %v1430_v33 = vpop.f32.mrf.mxu0  ;;  %v1719_v34 = vpop.f32.mrf.mxu1 }
 0x20d   : > { %v1853_v35 = vmax.f32 %v1851_v29, %v1852_v32 }
 0x20e   : > { %v1431_v36 = vpop.f32.mrf.mxu0  ;;  %v1720_v37 = vpop.f32.mrf.mxu1 }
 0x20f   : > { %v1854_v38 = vrot.slane %v1853_v35, 2 }
 0x210   : > { %v1433_v39 = vpop.f32.mrf.mxu0  ;;  %v1722_v40 = vpop.f32.mrf.mxu1 }
 0x211   : > { %v1855_v30 = vmax.f32 %v1853_v35, %v1854_v38 }
 0x212   : > { %v1436_v41 = vpop.f32.mrf.mxu0  ;;  %v1725_v42 = vpop.f32.mrf.mxu1 }
 0x213   : > { %v1856_v43 = vrot.slane %v1855_v30, 1  ;;  %v1726_v10 = vadd.f32 %v1725_v42, %v1436_v41 }
 0x214   : > { %v1438_v44 = vpop.f32.mrf.mxu0  ;;  %v1727_v45 = vpop.f32.mrf.mxu1 }
 0x215   : > { %v1857_v46 = vmax.f32 %v1855_v30, %v1856_v43 }
 0x216   : > { %v1439_v47 = vpop.f32.mrf.mxu0  ;;  %v1728_v48 = vpop.f32.mrf.mxu1 }
 0x217   : > { %v2808_v50 = vsel %vm1900_vm4, %v1857_v46, %v1899_v0  ;;  %v1721_v0 = vadd.f32 %v1720_v37, %v1431_v36  ;;  %v1729_v14 = vadd.f32 %v1728_v48, %v1439_v47 }
 0x218   : > { %v1441_v49 = vpop.f32.mrf.mxu0  ;;  %v1730_v51 = vpop.f32.mrf.mxu1 }
 0x219   : > { %v1858_v5 = vmax.f32 %v1718_v9, %v1721_v0 }
 0x21a   : > { %v1444_v52 = vpop.f32.mrf.mxu0  ;;  %v1733_v53 = vpop.f32.mrf.mxu1 }
 0x21b   : > { %v1859_v17 = vmax.f32 %v1858_v5, %v1726_v10  ;;  %v1734_v18 = vadd.f32 %v1733_v53, %v1444_v52 }
 0x21c   : > { %v1446_v54 = vpop.f32.mrf.mxu0  ;;  %v1735_v55 = vpop.f32.mrf.mxu1 }
 0x21d   : > { %v1860_v11 = vmax.f32 %v1859_v17, %v1729_v14 }
 0x21e   : > { %v1447_v56 = vpop.f32.mrf.mxu0  ;;  %v1736_v57 = vpop.f32.mrf.mxu1 }
 0x21f   : > { %v1737_v22 = vadd.f32 %v1736_v57, %v1447_v56  ;;  %v1861_v25 = vmax.f32 %v1860_v11, %v1734_v18 }
 0x220   : > { %v1449_v58 = vpop.f32.mrf.mxu0  ;;  %v1738_v59 = vpop.f32.mrf.mxu1 }
 0x221   : > { %v1862_v29 = vmax.f32 %v1861_v25, %v1737_v22 }
 0x222   : > { %v1452_v60 = vpop.f32.mrf.mxu0  ;;  %v1741_v61 = vpop.f32.mrf.mxu1 }
 0x223   : > { %v1742_v26 = vadd.f32 %v1741_v61, %v1452_v60 }
 0x224   : > { %v1454_v62 = vpop.f32.mrf.mxu0  ;;  %v1743_v63 = vpop.f32.mrf.mxu1 }
 0x225   : > { %v1863_v33 = vmax.f32 %v1862_v29, %v1742_v26 }
 0x226   : > { %v1455_v1 = vpop.f32.mrf.mxu0  ;;  %v1744_v2 = vpop.f32.mrf.mxu1 }
 0x227   : > { %v1745_v31 = vadd.f32 %v1744_v2, %v1455_v1 }
 0x228   : > { %v1457_v3 = vpop.f32.mrf.mxu0  ;;  %v1746_v4 = vpop.f32.mrf.mxu1 }
 0x229   : > { %v1864_v37 = vmax.f32 %v1863_v33, %v1745_v31 }
 0x22a   : > { %v1460_v6 = vpop.f32.mrf.mxu0  ;;  %v1749_v7 = vpop.f32.mrf.mxu1 }
 0x22b   : > { %v1750_v39 = vadd.f32 %v1749_v7, %v1460_v6  ;;  %v1865_v45 = vrot.slane %v1864_v37, 4 }
 0x22c   : > { %v1462_v8 = vpop.f32.mrf.mxu0  ;;  %v1751_v12 = vpop.f32.mrf.mxu1 }
 0x22d   : > { %v1866_v55 = vmax.f32 %v1864_v37, %v1865_v45 }
 0x22e   : > { %v1463_v13 = vpop.f32.mrf.mxu0  ;;  %v1752_v15 = vpop.f32.mrf.mxu1 }
 0x22f   : > { %v1753_v35 = vadd.f32 %v1752_v15, %v1463_v13  ;;  %v1867_v63 = vrot.slane %v1866_v55, 2 }
 0x230   : > { %v1465_v16 = vpop.f32.mrf.mxu0  ;;  %v1754_v19 = vpop.f32.mrf.mxu1 }
 0x231   : > { %v1871_v42 = vmax.f32 %v1750_v39, %v1753_v35  ;;  %v1868_v7 = vmax.f32 %v1866_v55, %v1867_v63 }
 0x232   : > { %v1468_v21 = vpop.f32.mrf.mxu0  ;;  %v1757_v23 = vpop.f32.mrf.mxu1 }
 0x233   : > { %v1758_v40 = vadd.f32 %v1757_v23, %v1468_v21  ;;  %v1869_v10 = vrot.slane %v1868_v7, 1 }
 0x234   : > { %v1470_v24 = vpop.f32.mrf.mxu0  ;;  %v1759_v27 = vpop.f32.mrf.mxu1 }
 0x235   : > { %v1872_v47 = vmax.f32 %v1871_v42, %v1758_v40  ;;  %v1870_v5 = vmax.f32 %v1868_v7, %v1869_v10 }
 0x236   : > { %v1471_v28 = vpop.f32.mrf.mxu0  ;;  %v1760_v20 = vpop.f32.mrf.mxu1 }
 0x237   : > { %v1761_v43 = vadd.f32 %v1760_v20, %v1471_v28  ;;  %v1903_v16 = vsel %vm1902_vm5, %v1870_v5, %v2808_v50 }
 0x238   : > { %v1473_v32 = vpop.f32.mrf.mxu0  ;;  %v1762_v34 = vpop.f32.mrf.mxu1 }
 0x239   : > { %v1873_v52 = vmax.f32 %v1872_v47, %v1761_v43 }
 0x23a   : > { %v1476_v36 = vpop.f32.mrf.mxu0  ;;  %v1765_v38 = vpop.f32.mrf.mxu1 }
 0x23b   : > { %v1766_v48 = vadd.f32 %v1765_v38, %v1476_v36 }
 0x23c   : > { %v1478_v30 = vpop.f32.mrf.mxu0  ;;  %v1767_v41 = vpop.f32.mrf.mxu1 }
 0x23d   : > { %v1874_v57 = vmax.f32 %v1873_v52, %v1766_v48 }
 0x23e   : > { %v1479_v44 = vpop.f32.mrf.mxu0  ;;  %v1768_v46 = vpop.f32.mrf.mxu1 }
 0x23f   : > { %v1769_v53 = vadd.f32 %v1768_v46, %v1479_v44 }
 0x240   : > { %v1481_v49 = vpop.f32.mrf.mxu0  ;;  %v1770_v51 = vpop.f32.mrf.mxu1 }
 0x241   : > { %v1875_v61 = vmax.f32 %v1874_v57, %v1769_v53 }
 0x242   : > { %v1484_v54 = vpop.f32.mrf.mxu0  ;;  %v1773_v56 = vpop.f32.mrf.mxu1 }
 0x243   : > { %v1774_v58 = vadd.f32 %v1773_v56, %v1484_v54 }
 0x244   : > { %v1486_v59 = vpop.f32.mrf.mxu0  ;;  %v1775_v60 = vpop.f32.mrf.mxu1 }
 0x245   : > { %v1876_v2 = vmax.f32 %v1875_v61, %v1774_v58 }
 0x246   : > { %v1487_v62 = vpop.f32.mrf.mxu0  ;;  %v1776_v1 = vpop.f32.mrf.mxu1 }
 0x247   : > { %v1777_v3 = vadd.f32 %v1776_v1, %v1487_v62 }
 0x248   : > { %v1489_v4 = vpop.f32.mrf.mxu0  ;;  %v1778_v6 = vpop.f32.mrf.mxu1 }
 0x249   : > { %v1877_v0 = vmax.f32 %v1876_v2, %v1777_v3 }
 0x24b   : > { %v1878_v8 = vrot.slane %v1877_v0, 4 }
 0x24d   : > { %v1879_v9 = vmax.f32 %v1877_v0, %v1878_v8 }
 0x24f   : > { %v1880_v12 = vrot.slane %v1879_v9, 2 }
 0x251   : > { %v1881_v13 = vmax.f32 %v1879_v9, %v1880_v12 }
 0x253   : > { %v1882_v14 = vrot.slane %v1881_v13, 1 }
 0x255   : > { %v1883_v15 = vmax.f32 %v1881_v13, %v1882_v14 }
 0x257   : > { %v1905_v17 = vsel %vm1904_vm6, %v1883_v15, %v1903_v16 }
 0x258   : > { %1907 = vst [vmem:[%s176_s8] sm:$0xff] %v1905_v17 }
 0x259   : > { %2531 = shalt.err (!%p2528_p0)
}
 0x25a   : > { %s2532_s4 = scalar_lea.hbm %s2816_s25, 128  ;;  %s2536_s7 = scalar_lea.hbm %s2854_s2, 512 }
 0x25b   : > { %p2533_p5 = scmp.ne.s32.totalorder %s2816_s25, %s2532_s4  ;;  %p2537_p4 = scmp.lt.s32.totalorder %s2816_s25, %s2854_s2 }
 0x25c   : > { %p2538_p6 = scmp.lt.s32.totalorder %s2536_s7, %s2532_s4 }
 0x25d   : > { %p2534_p9 = pnand %p2533_p5, %p2870_p10 }
 0x25e   : > { %p2539_p8 = por %p2538_p6, %p2537_p4 }
 0x25f   : > { %p2535_p1 = pneg %p2534_p9 }
 0x261   : > { %p2540_p3 = pnand %p2539_p8, %p2535_p1 }
 0x263   : > { %2543 = shalt.err (!%p2540_p3)
}
 0x264   : > { %2184 = dma.vmem_to_hbm [thread:$0]  (%p2870_p10), %s1923_s18, 128, %s2816_s25, %s1909_s26  }
 0x265 PF: > { %p2201_p7 = scmp.ge.s32.totalorder %s2586_s12, 2  ;;  %s1934_s23 = sand.u32 1, %s2574_s9  }
 0x266   : > { %p2871_p11 = scmp.ne.s32.totalorder %s2860_s16, 0  ;;  %s1935_s24 = scalar_lea.sflag [#allocation4], %s1934_s23 }
 0x268   : > { %p2195_p12 = pnand %p2201_p7, %p2871_p11 }
 0x26a   : > { %p2196_p2 = pneg %p2195_p12 }
 0x26c   : > { %2569 = dma.done.wait (%p2196_p2), %s1935_s24, 128  }
 0x26d   : > { %2571 = vsyncadd (%p2196_p2), %s1935_s24, 4294967168  ;;  %p16_p13 = scmp.ge.s32.totalorder %s2664_s21, 6   ;;  %s2872_s9 = smov %s2578_s10 }
 0x26e   : > { %s2873_s10 = smov %s2582_s11  ;;  %s2874_s11 = smov %s2681_s29 }
 0x26f   : > { %s2875_s12 = smov %s2664_s21  ;;  %18 = sbr.rel (!%p16_p13) target bundleno = 6 (0x6), region = 77 }
 0x274   :  { %1940 = vsyncpa [#allocation3], 1 }
 0x275   :  { %1942 = vsyncpa [#allocation3 + $0x1], 1 }
 0x276   :  { %1943 = vsyncpa [#allocation6], 1 }
 0x277   :  { %1944 = vsyncpa [#allocation4], 1 }
 0x278   :  { %1946 = vsyncpa [#allocation4 + $0x1], 1 }

</bundles_post_ra>
